<compile_context>
chip_gen: v6e
topology: v6e:2x2x1
jax: 0.10.0
libtpu: 0.0.40
codegen_flags: <defaults>
</compile_context>

<pallas_src>
import functools

import jax
import jax.numpy as jnp
from jax import lax
from jax.experimental import pallas as pl
from jax.experimental.pallas import tpu as pltpu

# ----------------------------- model config (small) -------------------------
VOCAB = 64
EMB = 32          # embedding_dim
H1 = 32           # hidden_dim1
H2 = 16           # hidden_dim2
FC_HID = 64       # hard-coded in the module (nn.Linear(hidden_dim2*2, 64))
OUT = 4           # output_dim
B = 2             # batch
T = 8             # sequence length
BN_EPS = 1e-5

_VMEM_SPEC = pl.BlockSpec(memory_space=pltpu.MemorySpace.VMEM)

# ---- bf16 weight slab row offsets (lane width 256, offsets multiple of 16) --
R_W1F, R_W1B, R_WHH1 = 0, 32, 64            # layer-1 input proj (fwd/bwd), fused whh
R_M1, R_M2, R_WHH2 = 128, 192, 256          # layer-2 fused input proj, fused whh
BF_ROWS, BF_LANES = 288, 256

# ---- f32 slab row offsets (lane width 256, offsets multiple of 8) -----------
R_B1C, R_B2C = 0, 8                          # fused gate biases
R_EMB, R_W1H, R_B1H = 16, 80, 112            # embedding table, fc1 (BN2 folded)
R_W2H, R_B2H = 120, 184                      # fc2
F32_ROWS, F32_LANES = 192, 256


# ----------------------------- fused LSTM cell --------------------------------
def _lstm_cell(gates, c, hidden):
    """Fused fwd+bwd LSTM cell. `gates` is (B, 4*hidden) with per-gate
    interleaved layout [i_f,i_b, f_f,f_b, g_f,g_b, o_f,o_b]; `c`/`h` carry the
    concatenated [fwd | bwd] state of width `hidden` (= 2*H per direction)."""
    sig = jax.nn.sigmoid(gates)
    th = jnp.tanh(gates)
    i = sig[:, 0 * hidden:1 * hidden]
    f = sig[:, 1 * hidden:2 * hidden]
    g = th[:, 2 * hidden:3 * hidden]
    o = sig[:, 3 * hidden:4 * hidden]
    c_new = f * c + i * g
    h_new = o * jnp.tanh(c_new)
    return h_new, c_new


# ----------------------------- fused Pallas kernel ----------------------------
def _fused_forward_kernel(ids_ref, wbf_ref, pf_ref, out_ref, *, seq_len, bsz):
    f32, bf16 = jnp.float32, jnp.bfloat16
    tb = seq_len * bsz

    # ---- in-kernel embedding: one-hot @ table on the MXU -----------------------
    emb = pf_ref[R_EMB:R_EMB + VOCAB, 0:EMB]                          # (64, 32) f32
    ids = ids_ref[...]                                                # (2*T*B, 1) i32
    hot = jnp.where(ids == lax.broadcasted_iota(jnp.int32, (2 * tb, VOCAB), 1),
                    1.0, 0.0)                                         # (2*T*B, VOCAB)
    x_both = jnp.dot(hot, emb, preferred_element_type=f32)            # (2*T*B, EMB)
    x_fwd = x_both[0:tb, :].astype(bf16)          # row block t = x(t)
    x_rev = x_both[tb:2 * tb, :].astype(bf16)     # row block t = x(T-1-t)

    # ---- layer 1: batched (hoisted) input projections --------------------------
    W1F = wbf_ref[R_W1F:R_W1F + EMB, :]                               # (32, 256) bf16
    W1B = wbf_ref[R_W1B:R_W1B + EMB, :]
    b1c = pf_ref[R_B1C:R_B1C + 1, :]                                  # (1, 256) f32
    gx1 = (jnp.dot(x_fwd, W1F, preferred_element_type=f32)
           + jnp.dot(x_rev, W1B, preferred_element_type=f32) + b1c)   # (T*B, 8*H1)

    # ---- layer 1: fused fwd+bwd recurrence (fully unrolled, T=8) ---------------
    WHH1 = wbf_ref[R_WHH1:R_WHH1 + 2 * H1, :]                         # (64, 256) bf16
    h1 = jnp.zeros((bsz, 2 * H1), f32)
    c1 = jnp.zeros((bsz, 2 * H1), f32)
    h1b = h1.astype(bf16)
    hs = []                                        # layer-1 outputs kept in registers
    for t in range(seq_len):
        g = (jnp.dot(h1b, WHH1, preferred_element_type=f32)
             + gx1[t * bsz:(t + 1) * bsz, :])
        h1, c1 = _lstm_cell(g, c1, 2 * H1)
        h1b = h1.astype(bf16)
        hs.append(h1b)                             # [h_fwd(t) | h_bwd(T-1-t)]

    # ---- layer 2: batched (hoisted) input projections, BN1 folded into M1/M2 ---
    # hs[t] = [y_f(t) | y_b(T-1-t)]; M1/M2 were row-fused at prep time so that
    #   gx2[t] = x2(t) @ W2F + x2(T-1-t) @ W2B   with x2(s) = [y_f(s) | y_b(s)]
    # falls out of exactly two matmuls, with no per-step lane shuffles.
    Hall = jnp.concatenate(hs, axis=0)                                # (T*B, 2*H1)
    Hrev = jnp.concatenate(hs[::-1], axis=0)
    M1 = wbf_ref[R_M1:R_M1 + 2 * H1, 0:8 * H2]                        # (64, 128) bf16
    M2 = wbf_ref[R_M2:R_M2 + 2 * H1, 0:8 * H2]
    b2c = pf_ref[R_B2C:R_B2C + 1, 0:8 * H2]                           # (1, 128) f32
    gx2 = (jnp.dot(Hall, M1, preferred_element_type=f32)
           + jnp.dot(Hrev, M2, preferred_element_type=f32) + b2c)     # (T*B, 8*H2)

    # ---- layer 2: fused fwd+bwd recurrence with running time-sum ---------------
    WHH2 = wbf_ref[R_WHH2:R_WHH2 + 2 * H2, 0:8 * H2]                  # (32, 128) bf16
    h2 = jnp.zeros((bsz, 2 * H2), f32)
    c2 = jnp.zeros((bsz, 2 * H2), f32)
    h2b = h2.astype(bf16)
    hsum = jnp.zeros((bsz, 2 * H2), f32)
    for t in range(seq_len):
        g = (jnp.dot(h2b, WHH2, preferred_element_type=f32)
             + gx2[t * bsz:(t + 1) * bsz, :])
        h2, c2 = _lstm_cell(g, c2, 2 * H2)
        h2b = h2.astype(bf16)
        hsum = hsum + h2        # sum over time is permutation-invariant per column

    # ---- head: mean over time -> fc1 (BN2 folded) -> relu -> fc2 ---------------
    w1h = pf_ref[R_W1H:R_W1H + 2 * H2, 0:FC_HID]                      # (32, 64)
    b1h = pf_ref[R_B1H:R_B1H + 1, 0:FC_HID]
    w2h = pf_ref[R_W2H:R_W2H + FC_HID, 0:OUT]                         # (64, 4)
    b2h = pf_ref[R_B2H:R_B2H + 1, 0:OUT]
    mean = hsum * (1.0 / seq_len)                                     # [mean_f | mean_b]
    hid = jnp.maximum(jnp.dot(mean, w1h, preferred_element_type=f32) + b1h, 0.0)
    out_ref[...] = jnp.dot(hid, w2h, preferred_element_type=f32) + b2h


# ----------------------------- one-time parameter prep ------------------------
def _fold_bn_into_matmul(gamma, beta, mean, var, w, b):
    """Fold eval-mode BN (y = (x-mean)*rsqrt(var+eps)*gamma + beta) into a
    following `y @ w + b`: y @ w + b == x @ (scale[:,None]*w) + (shift @ w + b)."""
    scale = gamma * lax.rsqrt(var + BN_EPS)
    shift = beta - mean * scale
    return scale[:, None] * w, b + shift @ w


def _interleave_gate_cols(wf, wb, h):
    """(rows, 4h) fwd / bwd matrices in torch (i,f,g,o) gate order ->
    (rows, 8h) with per-gate interleaved columns [i_f,i_b,f_f,f_b,g_f,g_b,o_f,o_b]."""
    parts = []
    for k in range(4):
        parts.append(wf[:, k * h:(k + 1) * h])
        parts.append(wb[:, k * h:(k + 1) * h])
    return jnp.concatenate(parts, axis=1)


def _pad_block(a, rows, cols):
    a = jnp.asarray(a, jnp.float32)
    return jnp.pad(a, ((0, rows - a.shape[0]), (0, cols - a.shape[1])))


def prepare_params(params):
    """Run ONCE outside jit: BN folding, fwd/bwd gate fusion, slab packing."""
    wih1f, whh1f, b1f = params["lstm1_fwd"]
    wih1b, whh1b, b1b = params["lstm1_bwd"]
    wih2f, whh2f, b2f = params["lstm2_fwd"]
    wih2b, whh2b, b2b = params["lstm2_bwd"]

    # fold eval-mode BN1 into lstm2 input projections
    g1, be1, m1v, v1 = params["bn1"]
    wih2f_f, b2f_f = _fold_bn_into_matmul(g1, be1, m1v, v1, wih2f, b2f)
    wih2b_f, b2b_f = _fold_bn_into_matmul(g1, be1, m1v, v1, wih2b, b2b)

    # fold eval-mode BN2 into fc1 (mean over time commutes with the affine BN)
    g2, be2, m2v, v2 = params["bn2"]
    w1h_f, b1h_f = _fold_bn_into_matmul(g2, be2, m2v, v2,
                                        params["fc1_w"], params["fc1_b"])

    # ---- layer 1 fused (per-gate interleaved) matrices ----
    z_wih1 = jnp.zeros_like(wih1f)
    z_whh1 = jnp.zeros_like(whh1f)
    W1F_int = _interleave_gate_cols(wih1f, z_wih1, H1)                # (EMB, 8*H1)
    W1B_int = _interleave_gate_cols(z_wih1, wih1b, H1)
    b1_comb = _interleave_gate_cols(b1f, b1b, H1)                     # (1, 8*H1)
    whh1_blk = jnp.concatenate(
        [_interleave_gate_cols(whh1f, z_whh1, H1),
         _interleave_gate_cols(z_whh1, whh1b, H1)], axis=0)           # (2*H1, 8*H1)

    # ---- layer 2 fused matrices (with BN1 folded in) ----
    z_wih2 = jnp.zeros_like(wih2f_f)
    z_whh2 = jnp.zeros_like(whh2f)
    W2F_int = _interleave_gate_cols(wih2f_f, z_wih2, H2)              # (2*H1, 8*H2)
    W2B_int = _interleave_gate_cols(z_wih2, wih2b_f, H2)
    b2_comb = _interleave_gate_cols(b2f_f, b2b_f, H2)                 # (1, 8*H2)
    whh2_blk = jnp.concatenate(
        [_interleave_gate_cols(whh2f, z_whh2, H2),
         _interleave_gate_cols(z_whh2, whh2b, H2)], axis=0)           # (2*H2, 8*H2)

    # Row-fused layer-2 projection matrices so the in-kernel stacked layer-1
    # outputs Hall/Hrev (whose halves are already time-forward / time-reversed)
    # feed gx2 with just two matmuls:
    #   gx2[t] = Hall[t] @ M1 + Hrev[t] @ M2
    M1 = jnp.concatenate([W2F_int[0:H1], W2B_int[H1:2 * H1]], axis=0)  # (2*H1, 8*H2)
    M2 = jnp.concatenate([W2B_int[0:H1], W2F_int[H1:2 * H1]], axis=0)

    # ---- pack bf16 matmul-weight slab (one DMA) ----
    slab_bf = jnp.concatenate([
        _pad_block(W1F_int, 32, BF_LANES),
        _pad_block(W1B_int, 32, BF_LANES),
        _pad_block(whh1_blk, 64, BF_LANES),
        _pad_block(M1, 64, BF_LANES),
        _pad_block(M2, 64, BF_LANES),
        _pad_block(whh2_blk, 32, BF_LANES),
    ], axis=0).astype(jnp.bfloat16)                                   # (288, 256)

    # ---- pack f32 bias / embedding / head slab (one DMA) ----
    slab_f32 = jnp.concatenate([
        _pad_block(b1_comb, 8, F32_LANES),
        _pad_block(b2_comb, 8, F32_LANES),
        _pad_block(params["embedding"], VOCAB, F32_LANES),
        _pad_block(w1h_f, 32, F32_LANES),
        _pad_block(b1h_f.reshape(1, -1), 8, F32_LANES),
        _pad_block(params["fc2_w"], FC_HID, F32_LANES),
        _pad_block(params["fc2_b"].reshape(1, -1), 8, F32_LANES),
    ], axis=0).astype(jnp.float32)                                    # (192, 256)

    assert slab_bf.shape == (BF_ROWS, BF_LANES)
    assert slab_f32.shape == (F32_ROWS, F32_LANES)
    return slab_bf, slab_f32


# ----------------------------- forward ---------------------------------------
@jax.jit
def bilstm_model_forward(slab_bf, slab_f32, token_ids):
    bsz, seq_len = token_ids.shape
    # tiny integer glue: time-major ids for both directions (16 ints each)
    ids_fwd = jnp.transpose(token_ids, (1, 0)).reshape(seq_len * bsz)
    ids_rev = jnp.transpose(token_ids[:, ::-1], (1, 0)).reshape(seq_len * bsz)
    ids_both = jnp.concatenate([ids_fwd, ids_rev]).astype(jnp.int32).reshape(-1, 1)

    kernel = functools.partial(_fused_forward_kernel, seq_len=seq_len, bsz=bsz)
    return pl.pallas_call(
        kernel,
        out_shape=jax.ShapeDtypeStruct((bsz, OUT), jnp.float32),
        in_specs=[_VMEM_SPEC, _VMEM_SPEC, _VMEM_SPEC],
        out_specs=_VMEM_SPEC,
    )(ids_both, slab_bf, slab_f32)


# ----------------------------- parameters ------------------------------------
def init_params(key):
    ks = iter(jax.random.split(key, 32))
    n = lambda shape, s=0.1: s * jax.random.normal(next(ks), shape, jnp.float32)

    def lstm_dir_params(in_dim, hidden):
        wih_t = n((in_dim, 4 * hidden))                   # torch weight_ih.T
        whh_t = n((hidden, 4 * hidden))                   # torch weight_hh.T
        bias = n((1, 4 * hidden))                         # bias_ih + bias_hh
        return (wih_t, whh_t, bias)

    def bn_params(c):
        gamma = 1.0 + n((c,))
        beta = n((c,))
        running_mean = n((c,))
        running_var = 1.0 + jnp.abs(n((c,)))
        return (gamma, beta, running_mean, running_var)

    params = {
        "embedding": n((VOCAB, EMB), 0.5),
        "lstm1_fwd": lstm_dir_params(EMB, H1),
        "lstm1_bwd": lstm_dir_params(EMB, H1),
        "bn1": bn_params(2 * H1),
        "lstm2_fwd": lstm_dir_params(2 * H1, H2),
        "lstm2_bwd": lstm_dir_params(2 * H1, H2),
        "bn2": bn_params(2 * H2),
        "fc1_w": n((2 * H2, FC_HID)),                     # torch fc1.weight.T
        "fc1_b": n((FC_HID,)),
        "fc2_w": n((FC_HID, OUT)),                        # torch fc2.weight.T
        "fc2_b": n((OUT,)),
    }
    return params


# ----------------------------- pure-JAX reference (unfolded BN) --------------
def _ref_lstm_dir(x_tbf, wih_t, whh_t, b):
    hidden = whh_t.shape[0]
    bsz = x_tbf.shape[1]
    hp = functools.partial(jnp.dot, precision=lax.Precision.HIGHEST)

    def step(carry, x_t):
        h, c = carry
        gates = hp(x_t, wih_t) + hp(h, whh_t) + b
        i = jax.nn.sigmoid(gates[:, :hidden])
        f = jax.nn.sigmoid(gates[:, hidden:2 * hidden])
        g = jnp.tanh(gates[:, 2 * hidden:3 * hidden])
        o = jax.nn.sigmoid(gates[:, 3 * hidden:])
        c = f * c + i * g
        h = o * jnp.tanh(c)
        return (h, c), h

    init = (jnp.zeros((bsz, hidden), jnp.float32),
            jnp.zeros((bsz, hidden), jnp.float32))
    _, ys = lax.scan(step, init, x_tbf)
    return ys


def reference_forward(params, token_ids):
    hp = functools.partial(jnp.dot, precision=lax.Precision.HIGHEST)

    def ref_bilstm(x, pf, pb):
        x_t = jnp.transpose(x, (1, 0, 2))
        yf = _ref_lstm_dir(x_t, *pf)
        yb = _ref_lstm_dir(x_t[::-1], *pb)[::-1]
        return jnp.transpose(jnp.concatenate([yf, yb], axis=-1), (1, 0, 2))

    def ref_bn(x, gamma, beta, mean, var):
        return (x - mean) * lax.rsqrt(var + BN_EPS) * gamma + beta

    x = jnp.take(params["embedding"], token_ids, axis=0)
    x = ref_bilstm(x, params["lstm1_fwd"], params["lstm1_bwd"])
    x = ref_bn(x, *params["bn1"])
    x = ref_bilstm(x, params["lstm2_fwd"], params["lstm2_bwd"])
    x = ref_bn(x, *params["bn2"])
    x = x.mean(axis=1)
    x = jnp.maximum(hp(x, params["fc1_w"]) + params["fc1_b"], 0.0)
    return hp(x, params["fc2_w"]) + params["fc2_b"]


# ----------------------------- main -------------------------------------------
if __name__ == "__main__":
    key = jax.random.PRNGKey(0)
    pkey, xkey = jax.random.split(key)
    params = init_params(pkey)
    token_ids = jax.random.randint(xkey, (B, T), 0, VOCAB, dtype=jnp.int32)

    slab_bf, slab_f32 = prepare_params(params)     # one-time prep (BN fold, fusion, packing)

    out = bilstm_model_forward(slab_bf, slab_f32, token_ids)
    out = jax.block_until_ready(out)
    assert out.shape == (B, OUT), out.shape

    ref = jax.block_until_ready(reference_forward(params, token_ids))
    assert bool(jnp.allclose(out, ref, rtol=1e-2, atol=1e-2)), (out, ref)

    print("KERNEL_OK")
</pallas_src>

<mosaic_0001>
module attributes {stable_mosaic.version = 11 : i64} {
  func.func @_fused_forward_kernel(%arg0: memref<32x1xi32, #tpu.memory_space<vmem>>, %arg1: memref<288x256xbf16, #tpu.memory_space<vmem>>, %arg2: memref<192x256xf32, #tpu.memory_space<vmem>>, %arg3: memref<2x4xf32, #tpu.memory_space<vmem>>) attributes {dimension_semantics = [], scalar_prefetch = 0 : i64, scratch_operands = 0 : i64, tpu.core_type = #tpu.core_type<tc>} {
    %c16 = arith.constant 16 : index
    %c0 = arith.constant 0 : index
    %0 = vector.load %arg2[%c16, %c0] : memref<192x256xf32, #tpu.memory_space<vmem>>, vector<64x32xf32>
    %c0_0 = arith.constant 0 : index
    %c0_1 = arith.constant 0 : index
    %1 = vector.load %arg0[%c0_0, %c0_1] : memref<32x1xi32, #tpu.memory_space<vmem>>, vector<32x1xi32>
    %2 = tpu.iota {dimensions = array<i32: 1>} : vector<32x64xi32>
    %3 = vector.broadcast %1 : vector<32x1xi32> to vector<32x64xi32>
    %4 = arith.cmpi eq, %3, %2 : vector<32x64xi32>
    %cst = arith.constant 1.000000e+00 : f32
    %cst_2 = arith.constant 0.000000e+00 : f32
    %5 = vector.broadcast %cst : f32 to vector<32x64xf32>
    %6 = vector.broadcast %cst_2 : f32 to vector<32x64xf32>
    %7 = arith.select %4, %5, %6 : vector<32x64xi1>, vector<32x64xf32>
    %cst_3 = arith.constant dense<0.000000e+00> : vector<32x32xf32>
    %8 = tpu.matmul %7, %0, %cst_3 {dimension_numbers = #tpu.dot_dimension_numbers<[1], [0], [0], [1], [0, 0, 1, 1], [], []>} : vector<32x64xf32>, vector<64x32xf32>, vector<32x32xf32> -> vector<32x32xf32>
    %9 = vector.extract_strided_slice %8 {offsets = [0, 0], sizes = [16, 32], strides = [1, 1]} : vector<32x32xf32> to vector<16x32xf32>
    %10 = arith.truncf %9 : vector<16x32xf32> to vector<16x32xbf16>
    %11 = vector.extract_strided_slice %8 {offsets = [16, 0], sizes = [16, 32], strides = [1, 1]} : vector<32x32xf32> to vector<16x32xf32>
    %12 = arith.truncf %11 : vector<16x32xf32> to vector<16x32xbf16>
    %c0_4 = arith.constant 0 : index
    %c0_5 = arith.constant 0 : index
    %13 = vector.load %arg1[%c0_4, %c0_5] : memref<288x256xbf16, #tpu.memory_space<vmem>>, vector<32x256xbf16>
    %c32 = arith.constant 32 : index
    %c0_6 = arith.constant 0 : index
    %14 = vector.load %arg1[%c32, %c0_6] : memref<288x256xbf16, #tpu.memory_space<vmem>>, vector<32x256xbf16>
    %c0_7 = arith.constant 0 : index
    %c0_8 = arith.constant 0 : index
    %15 = vector.load %arg2[%c0_7, %c0_8] : memref<192x256xf32, #tpu.memory_space<vmem>>, vector<1x256xf32>
    %cst_9 = arith.constant dense<0.000000e+00> : vector<16x256xf32>
    %16 = tpu.matmul %10, %13, %cst_9 {dimension_numbers = #tpu.dot_dimension_numbers<[1], [0], [0], [1], [0, 0, 1, 1], [], []>} : vector<16x32xbf16>, vector<32x256xbf16>, vector<16x256xf32> -> vector<16x256xf32>
    %cst_10 = arith.constant dense<0.000000e+00> : vector<16x256xf32>
    %17 = tpu.matmul %12, %14, %cst_10 {dimension_numbers = #tpu.dot_dimension_numbers<[1], [0], [0], [1], [0, 0, 1, 1], [], []>} : vector<16x32xbf16>, vector<32x256xbf16>, vector<16x256xf32> -> vector<16x256xf32>
    %18 = arith.addf %16, %17 : vector<16x256xf32>
    %19 = vector.broadcast %15 : vector<1x256xf32> to vector<16x256xf32>
    %20 = arith.addf %18, %19 : vector<16x256xf32>
    %c64 = arith.constant 64 : index
    %c0_11 = arith.constant 0 : index
    %21 = vector.load %arg1[%c64, %c0_11] : memref<288x256xbf16, #tpu.memory_space<vmem>>, vector<64x256xbf16>
    %cst_12 = arith.constant 0.000000e+00 : f32
    %22 = vector.broadcast %cst_12 : f32 to vector<2x64xf32>
    %cst_13 = arith.constant 0.000000e+00 : f32
    %23 = vector.broadcast %cst_13 : f32 to vector<2x64xf32>
    %24 = arith.truncf %22 : vector<2x64xf32> to vector<2x64xbf16>
    %cst_14 = arith.constant dense<0.000000e+00> : vector<2x256xf32>
    %25 = tpu.matmul %24, %21, %cst_14 {dimension_numbers = #tpu.dot_dimension_numbers<[1], [0], [0], [1], [0, 0, 1, 1], [], []>} : vector<2x64xbf16>, vector<64x256xbf16>, vector<2x256xf32> -> vector<2x256xf32>
    %26 = vector.extract_strided_slice %20 {offsets = [0, 0], sizes = [2, 256], strides = [1, 1]} : vector<16x256xf32> to vector<2x256xf32>
    %27 = arith.addf %25, %26 : vector<2x256xf32>
    %28 = arith.negf %27 : vector<2x256xf32>
    %29 = math.exp %28 : vector<2x256xf32>
    %cst_15 = arith.constant 1.000000e+00 : f32
    %30 = vector.broadcast %cst_15 : f32 to vector<2x256xf32>
    %31 = arith.addf %30, %29 : vector<2x256xf32>
    %32 = arith.divf %30, %31 : vector<2x256xf32>
    %33 = math.tanh %27 : vector<2x256xf32>
    %34 = vector.extract_strided_slice %32 {offsets = [0, 0], sizes = [2, 64], strides = [1, 1]} : vector<2x256xf32> to vector<2x64xf32>
    %35 = vector.extract_strided_slice %32 {offsets = [0, 64], sizes = [2, 64], strides = [1, 1]} : vector<2x256xf32> to vector<2x64xf32>
    %36 = vector.extract_strided_slice %33 {offsets = [0, 128], sizes = [2, 64], strides = [1, 1]} : vector<2x256xf32> to vector<2x64xf32>
    %37 = vector.extract_strided_slice %32 {offsets = [0, 192], sizes = [2, 64], strides = [1, 1]} : vector<2x256xf32> to vector<2x64xf32>
    %38 = arith.mulf %35, %23 : vector<2x64xf32>
    %39 = arith.mulf %34, %36 : vector<2x64xf32>
    %40 = arith.addf %38, %39 : vector<2x64xf32>
    %41 = math.tanh %40 : vector<2x64xf32>
    %42 = arith.mulf %37, %41 : vector<2x64xf32>
    %43 = arith.truncf %42 : vector<2x64xf32> to vector<2x64xbf16>
    %cst_16 = arith.constant dense<0.000000e+00> : vector<2x256xf32>
    %44 = tpu.matmul %43, %21, %cst_16 {dimension_numbers = #tpu.dot_dimension_numbers<[1], [0], [0], [1], [0, 0, 1, 1], [], []>} : vector<2x64xbf16>, vector<64x256xbf16>, vector<2x256xf32> -> vector<2x256xf32>
    %45 = vector.extract_strided_slice %20 {offsets = [2, 0], sizes = [2, 256], strides = [1, 1]} : vector<16x256xf32> to vector<2x256xf32>
    %46 = arith.addf %44, %45 : vector<2x256xf32>
    %47 = arith.negf %46 : vector<2x256xf32>
    %48 = math.exp %47 : vector<2x256xf32>
    %cst_17 = arith.constant 1.000000e+00 : f32
    %49 = vector.broadcast %cst_17 : f32 to vector<2x256xf32>
    %50 = arith.addf %49, %48 : vector<2x256xf32>
    %51 = arith.divf %49, %50 : vector<2x256xf32>
    %52 = math.tanh %46 : vector<2x256xf32>
    %53 = vector.extract_strided_slice %51 {offsets = [0, 0], sizes = [2, 64], strides = [1, 1]} : vector<2x256xf32> to vector<2x64xf32>
    %54 = vector.extract_strided_slice %51 {offsets = [0, 64], sizes = [2, 64], strides = [1, 1]} : vector<2x256xf32> to vector<2x64xf32>
    %55 = vector.extract_strided_slice %52 {offsets = [0, 128], sizes = [2, 64], strides = [1, 1]} : vector<2x256xf32> to vector<2x64xf32>
    %56 = vector.extract_strided_slice %51 {offsets = [0, 192], sizes = [2, 64], strides = [1, 1]} : vector<2x256xf32> to vector<2x64xf32>
    %57 = arith.mulf %54, %40 : vector<2x64xf32>
    %58 = arith.mulf %53, %55 : vector<2x64xf32>
    %59 = arith.addf %57, %58 : vector<2x64xf32>
    %60 = math.tanh %59 : vector<2x64xf32>
    %61 = arith.mulf %56, %60 : vector<2x64xf32>
    %62 = arith.truncf %61 : vector<2x64xf32> to vector<2x64xbf16>
    %cst_18 = arith.constant dense<0.000000e+00> : vector<2x256xf32>
    %63 = tpu.matmul %62, %21, %cst_18 {dimension_numbers = #tpu.dot_dimension_numbers<[1], [0], [0], [1], [0, 0, 1, 1], [], []>} : vector<2x64xbf16>, vector<64x256xbf16>, vector<2x256xf32> -> vector<2x256xf32>
    %64 = vector.extract_strided_slice %20 {offsets = [4, 0], sizes = [2, 256], strides = [1, 1]} : vector<16x256xf32> to vector<2x256xf32>
    %65 = arith.addf %63, %64 : vector<2x256xf32>
    %66 = arith.negf %65 : vector<2x256xf32>
    %67 = math.exp %66 : vector<2x256xf32>
    %cst_19 = arith.constant 1.000000e+00 : f32
    %68 = vector.broadcast %cst_19 : f32 to vector<2x256xf32>
    %69 = arith.addf %68, %67 : vector<2x256xf32>
    %70 = arith.divf %68, %69 : vector<2x256xf32>
    %71 = math.tanh %65 : vector<2x256xf32>
    %72 = vector.extract_strided_slice %70 {offsets = [0, 0], sizes = [2, 64], strides = [1, 1]} : vector<2x256xf32> to vector<2x64xf32>
    %73 = vector.extract_strided_slice %70 {offsets = [0, 64], sizes = [2, 64], strides = [1, 1]} : vector<2x256xf32> to vector<2x64xf32>
    %74 = vector.extract_strided_slice %71 {offsets = [0, 128], sizes = [2, 64], strides = [1, 1]} : vector<2x256xf32> to vector<2x64xf32>
    %75 = vector.extract_strided_slice %70 {offsets = [0, 192], sizes = [2, 64], strides = [1, 1]} : vector<2x256xf32> to vector<2x64xf32>
    %76 = arith.mulf %73, %59 : vector<2x64xf32>
    %77 = arith.mulf %72, %74 : vector<2x64xf32>
    %78 = arith.addf %76, %77 : vector<2x64xf32>
    %79 = math.tanh %78 : vector<2x64xf32>
    %80 = arith.mulf %75, %79 : vector<2x64xf32>
    %81 = arith.truncf %80 : vector<2x64xf32> to vector<2x64xbf16>
    %cst_20 = arith.constant dense<0.000000e+00> : vector<2x256xf32>
    %82 = tpu.matmul %81, %21, %cst_20 {dimension_numbers = #tpu.dot_dimension_numbers<[1], [0], [0], [1], [0, 0, 1, 1], [], []>} : vector<2x64xbf16>, vector<64x256xbf16>, vector<2x256xf32> -> vector<2x256xf32>
    %83 = vector.extract_strided_slice %20 {offsets = [6, 0], sizes = [2, 256], strides = [1, 1]} : vector<16x256xf32> to vector<2x256xf32>
    %84 = arith.addf %82, %83 : vector<2x256xf32>
    %85 = arith.negf %84 : vector<2x256xf32>
    %86 = math.exp %85 : vector<2x256xf32>
    %cst_21 = arith.constant 1.000000e+00 : f32
    %87 = vector.broadcast %cst_21 : f32 to vector<2x256xf32>
    %88 = arith.addf %87, %86 : vector<2x256xf32>
    %89 = arith.divf %87, %88 : vector<2x256xf32>
    %90 = math.tanh %84 : vector<2x256xf32>
    %91 = vector.extract_strided_slice %89 {offsets = [0, 0], sizes = [2, 64], strides = [1, 1]} : vector<2x256xf32> to vector<2x64xf32>
    %92 = vector.extract_strided_slice %89 {offsets = [0, 64], sizes = [2, 64], strides = [1, 1]} : vector<2x256xf32> to vector<2x64xf32>
    %93 = vector.extract_strided_slice %90 {offsets = [0, 128], sizes = [2, 64], strides = [1, 1]} : vector<2x256xf32> to vector<2x64xf32>
    %94 = vector.extract_strided_slice %89 {offsets = [0, 192], sizes = [2, 64], strides = [1, 1]} : vector<2x256xf32> to vector<2x64xf32>
    %95 = arith.mulf %92, %78 : vector<2x64xf32>
    %96 = arith.mulf %91, %93 : vector<2x64xf32>
    %97 = arith.addf %95, %96 : vector<2x64xf32>
    %98 = math.tanh %97 : vector<2x64xf32>
    %99 = arith.mulf %94, %98 : vector<2x64xf32>
    %100 = arith.truncf %99 : vector<2x64xf32> to vector<2x64xbf16>
    %cst_22 = arith.constant dense<0.000000e+00> : vector<2x256xf32>
    %101 = tpu.matmul %100, %21, %cst_22 {dimension_numbers = #tpu.dot_dimension_numbers<[1], [0], [0], [1], [0, 0, 1, 1], [], []>} : vector<2x64xbf16>, vector<64x256xbf16>, vector<2x256xf32> -> vector<2x256xf32>
    %102 = vector.extract_strided_slice %20 {offsets = [8, 0], sizes = [2, 256], strides = [1, 1]} : vector<16x256xf32> to vector<2x256xf32>
    %103 = arith.addf %101, %102 : vector<2x256xf32>
    %104 = arith.negf %103 : vector<2x256xf32>
    %105 = math.exp %104 : vector<2x256xf32>
    %cst_23 = arith.constant 1.000000e+00 : f32
    %106 = vector.broadcast %cst_23 : f32 to vector<2x256xf32>
    %107 = arith.addf %106, %105 : vector<2x256xf32>
    %108 = arith.divf %106, %107 : vector<2x256xf32>
    %109 = math.tanh %103 : vector<2x256xf32>
    %110 = vector.extract_strided_slice %108 {offsets = [0, 0], sizes = [2, 64], strides = [1, 1]} : vector<2x256xf32> to vector<2x64xf32>
    %111 = vector.extract_strided_slice %108 {offsets = [0, 64], sizes = [2, 64], strides = [1, 1]} : vector<2x256xf32> to vector<2x64xf32>
    %112 = vector.extract_strided_slice %109 {offsets = [0, 128], sizes = [2, 64], strides = [1, 1]} : vector<2x256xf32> to vector<2x64xf32>
    %113 = vector.extract_strided_slice %108 {offsets = [0, 192], sizes = [2, 64], strides = [1, 1]} : vector<2x256xf32> to vector<2x64xf32>
    %114 = arith.mulf %111, %97 : vector<2x64xf32>
    %115 = arith.mulf %110, %112 : vector<2x64xf32>
    %116 = arith.addf %114, %115 : vector<2x64xf32>
    %117 = math.tanh %116 : vector<2x64xf32>
    %118 = arith.mulf %113, %117 : vector<2x64xf32>
    %119 = arith.truncf %118 : vector<2x64xf32> to vector<2x64xbf16>
    %cst_24 = arith.constant dense<0.000000e+00> : vector<2x256xf32>
    %120 = tpu.matmul %119, %21, %cst_24 {dimension_numbers = #tpu.dot_dimension_numbers<[1], [0], [0], [1], [0, 0, 1, 1], [], []>} : vector<2x64xbf16>, vector<64x256xbf16>, vector<2x256xf32> -> vector<2x256xf32>
    %121 = vector.extract_strided_slice %20 {offsets = [10, 0], sizes = [2, 256], strides = [1, 1]} : vector<16x256xf32> to vector<2x256xf32>
    %122 = arith.addf %120, %121 : vector<2x256xf32>
    %123 = arith.negf %122 : vector<2x256xf32>
    %124 = math.exp %123 : vector<2x256xf32>
    %cst_25 = arith.constant 1.000000e+00 : f32
    %125 = vector.broadcast %cst_25 : f32 to vector<2x256xf32>
    %126 = arith.addf %125, %124 : vector<2x256xf32>
    %127 = arith.divf %125, %126 : vector<2x256xf32>
    %128 = math.tanh %122 : vector<2x256xf32>
    %129 = vector.extract_strided_slice %127 {offsets = [0, 0], sizes = [2, 64], strides = [1, 1]} : vector<2x256xf32> to vector<2x64xf32>
    %130 = vector.extract_strided_slice %127 {offsets = [0, 64], sizes = [2, 64], strides = [1, 1]} : vector<2x256xf32> to vector<2x64xf32>
    %131 = vector.extract_strided_slice %128 {offsets = [0, 128], sizes = [2, 64], strides = [1, 1]} : vector<2x256xf32> to vector<2x64xf32>
    %132 = vector.extract_strided_slice %127 {offsets = [0, 192], sizes = [2, 64], strides = [1, 1]} : vector<2x256xf32> to vector<2x64xf32>
    %133 = arith.mulf %130, %116 : vector<2x64xf32>
    %134 = arith.mulf %129, %131 : vector<2x64xf32>
    %135 = arith.addf %133, %134 : vector<2x64xf32>
    %136 = math.tanh %135 : vector<2x64xf32>
    %137 = arith.mulf %132, %136 : vector<2x64xf32>
    %138 = arith.truncf %137 : vector<2x64xf32> to vector<2x64xbf16>
    %cst_26 = arith.constant dense<0.000000e+00> : vector<2x256xf32>
    %139 = tpu.matmul %138, %21, %cst_26 {dimension_numbers = #tpu.dot_dimension_numbers<[1], [0], [0], [1], [0, 0, 1, 1], [], []>} : vector<2x64xbf16>, vector<64x256xbf16>, vector<2x256xf32> -> vector<2x256xf32>
    %140 = vector.extract_strided_slice %20 {offsets = [12, 0], sizes = [2, 256], strides = [1, 1]} : vector<16x256xf32> to vector<2x256xf32>
    %141 = arith.addf %139, %140 : vector<2x256xf32>
    %142 = arith.negf %141 : vector<2x256xf32>
    %143 = math.exp %142 : vector<2x256xf32>
    %cst_27 = arith.constant 1.000000e+00 : f32
    %144 = vector.broadcast %cst_27 : f32 to vector<2x256xf32>
    %145 = arith.addf %144, %143 : vector<2x256xf32>
    %146 = arith.divf %144, %145 : vector<2x256xf32>
    %147 = math.tanh %141 : vector<2x256xf32>
    %148 = vector.extract_strided_slice %146 {offsets = [0, 0], sizes = [2, 64], strides = [1, 1]} : vector<2x256xf32> to vector<2x64xf32>
    %149 = vector.extract_strided_slice %146 {offsets = [0, 64], sizes = [2, 64], strides = [1, 1]} : vector<2x256xf32> to vector<2x64xf32>
    %150 = vector.extract_strided_slice %147 {offsets = [0, 128], sizes = [2, 64], strides = [1, 1]} : vector<2x256xf32> to vector<2x64xf32>
    %151 = vector.extract_strided_slice %146 {offsets = [0, 192], sizes = [2, 64], strides = [1, 1]} : vector<2x256xf32> to vector<2x64xf32>
    %152 = arith.mulf %149, %135 : vector<2x64xf32>
    %153 = arith.mulf %148, %150 : vector<2x64xf32>
    %154 = arith.addf %152, %153 : vector<2x64xf32>
    %155 = math.tanh %154 : vector<2x64xf32>
    %156 = arith.mulf %151, %155 : vector<2x64xf32>
    %157 = arith.truncf %156 : vector<2x64xf32> to vector<2x64xbf16>
    %cst_28 = arith.constant dense<0.000000e+00> : vector<2x256xf32>
    %158 = tpu.matmul %157, %21, %cst_28 {dimension_numbers = #tpu.dot_dimension_numbers<[1], [0], [0], [1], [0, 0, 1, 1], [], []>} : vector<2x64xbf16>, vector<64x256xbf16>, vector<2x256xf32> -> vector<2x256xf32>
    %159 = vector.extract_strided_slice %20 {offsets = [14, 0], sizes = [2, 256], strides = [1, 1]} : vector<16x256xf32> to vector<2x256xf32>
    %160 = arith.addf %158, %159 : vector<2x256xf32>
    %161 = arith.negf %160 : vector<2x256xf32>
    %162 = math.exp %161 : vector<2x256xf32>
    %cst_29 = arith.constant 1.000000e+00 : f32
    %163 = vector.broadcast %cst_29 : f32 to vector<2x256xf32>
    %164 = arith.addf %163, %162 : vector<2x256xf32>
    %165 = arith.divf %163, %164 : vector<2x256xf32>
    %166 = math.tanh %160 : vector<2x256xf32>
    %167 = vector.extract_strided_slice %165 {offsets = [0, 0], sizes = [2, 64], strides = [1, 1]} : vector<2x256xf32> to vector<2x64xf32>
    %168 = vector.extract_strided_slice %165 {offsets = [0, 64], sizes = [2, 64], strides = [1, 1]} : vector<2x256xf32> to vector<2x64xf32>
    %169 = vector.extract_strided_slice %166 {offsets = [0, 128], sizes = [2, 64], strides = [1, 1]} : vector<2x256xf32> to vector<2x64xf32>
    %170 = vector.extract_strided_slice %165 {offsets = [0, 192], sizes = [2, 64], strides = [1, 1]} : vector<2x256xf32> to vector<2x64xf32>
    %171 = arith.mulf %168, %154 : vector<2x64xf32>
    %172 = arith.mulf %167, %169 : vector<2x64xf32>
    %173 = arith.addf %171, %172 : vector<2x64xf32>
    %174 = math.tanh %173 : vector<2x64xf32>
    %175 = arith.mulf %170, %174 : vector<2x64xf32>
    %176 = arith.truncf %175 : vector<2x64xf32> to vector<2x64xbf16>
    %177 = tpu.concatenate %43, %62, %81, %100, %119, %138, %157, %176 in 0 : vector<2x64xbf16>, vector<2x64xbf16>, vector<2x64xbf16>, vector<2x64xbf16>, vector<2x64xbf16>, vector<2x64xbf16>, vector<2x64xbf16>, vector<2x64xbf16> -> vector<16x64xbf16>
    %178 = tpu.concatenate %176, %157, %138, %119, %100, %81, %62, %43 in 0 : vector<2x64xbf16>, vector<2x64xbf16>, vector<2x64xbf16>, vector<2x64xbf16>, vector<2x64xbf16>, vector<2x64xbf16>, vector<2x64xbf16>, vector<2x64xbf16> -> vector<16x64xbf16>
    %c128 = arith.constant 128 : index
    %c0_30 = arith.constant 0 : index
    %179 = vector.load %arg1[%c128, %c0_30] : memref<288x256xbf16, #tpu.memory_space<vmem>>, vector<64x128xbf16>
    %c192 = arith.constant 192 : index
    %c0_31 = arith.constant 0 : index
    %180 = vector.load %arg1[%c192, %c0_31] : memref<288x256xbf16, #tpu.memory_space<vmem>>, vector<64x128xbf16>
    %c8 = arith.constant 8 : index
    %c0_32 = arith.constant 0 : index
    %181 = vector.load %arg2[%c8, %c0_32] : memref<192x256xf32, #tpu.memory_space<vmem>>, vector<1x128xf32>
    %cst_33 = arith.constant dense<0.000000e+00> : vector<16x128xf32>
    %182 = tpu.matmul %177, %179, %cst_33 {dimension_numbers = #tpu.dot_dimension_numbers<[1], [0], [0], [1], [0, 0, 1, 1], [], []>} : vector<16x64xbf16>, vector<64x128xbf16>, vector<16x128xf32> -> vector<16x128xf32>
    %cst_34 = arith.constant dense<0.000000e+00> : vector<16x128xf32>
    %183 = tpu.matmul %178, %180, %cst_34 {dimension_numbers = #tpu.dot_dimension_numbers<[1], [0], [0], [1], [0, 0, 1, 1], [], []>} : vector<16x64xbf16>, vector<64x128xbf16>, vector<16x128xf32> -> vector<16x128xf32>
    %184 = arith.addf %182, %183 : vector<16x128xf32>
    %185 = vector.broadcast %181 : vector<1x128xf32> to vector<16x128xf32>
    %186 = arith.addf %184, %185 : vector<16x128xf32>
    %c256 = arith.constant 256 : index
    %c0_35 = arith.constant 0 : index
    %187 = vector.load %arg1[%c256, %c0_35] : memref<288x256xbf16, #tpu.memory_space<vmem>>, vector<32x128xbf16>
    %cst_36 = arith.constant 0.000000e+00 : f32
    %188 = vector.broadcast %cst_36 : f32 to vector<2x32xf32>
    %cst_37 = arith.constant 0.000000e+00 : f32
    %189 = vector.broadcast %cst_37 : f32 to vector<2x32xf32>
    %190 = arith.truncf %188 : vector<2x32xf32> to vector<2x32xbf16>
    %cst_38 = arith.constant 0.000000e+00 : f32
    %191 = vector.broadcast %cst_38 : f32 to vector<2x32xf32>
    %cst_39 = arith.constant dense<0.000000e+00> : vector<2x128xf32>
    %192 = tpu.matmul %190, %187, %cst_39 {dimension_numbers = #tpu.dot_dimension_numbers<[1], [0], [0], [1], [0, 0, 1, 1], [], []>} : vector<2x32xbf16>, vector<32x128xbf16>, vector<2x128xf32> -> vector<2x128xf32>
    %193 = vector.extract_strided_slice %186 {offsets = [0, 0], sizes = [2, 128], strides = [1, 1]} : vector<16x128xf32> to vector<2x128xf32>
    %194 = arith.addf %192, %193 : vector<2x128xf32>
    %195 = arith.negf %194 : vector<2x128xf32>
    %196 = math.exp %195 : vector<2x128xf32>
    %cst_40 = arith.constant 1.000000e+00 : f32
    %197 = vector.broadcast %cst_40 : f32 to vector<2x128xf32>
    %198 = arith.addf %197, %196 : vector<2x128xf32>
    %199 = arith.divf %197, %198 : vector<2x128xf32>
    %200 = math.tanh %194 : vector<2x128xf32>
    %201 = vector.extract_strided_slice %199 {offsets = [0, 0], sizes = [2, 32], strides = [1, 1]} : vector<2x128xf32> to vector<2x32xf32>
    %202 = vector.extract_strided_slice %199 {offsets = [0, 32], sizes = [2, 32], strides = [1, 1]} : vector<2x128xf32> to vector<2x32xf32>
    %203 = vector.extract_strided_slice %200 {offsets = [0, 64], sizes = [2, 32], strides = [1, 1]} : vector<2x128xf32> to vector<2x32xf32>
    %204 = vector.extract_strided_slice %199 {offsets = [0, 96], sizes = [2, 32], strides = [1, 1]} : vector<2x128xf32> to vector<2x32xf32>
    %205 = arith.mulf %202, %189 : vector<2x32xf32>
    %206 = arith.mulf %201, %203 : vector<2x32xf32>
    %207 = arith.addf %205, %206 : vector<2x32xf32>
    %208 = math.tanh %207 : vector<2x32xf32>
    %209 = arith.mulf %204, %208 : vector<2x32xf32>
    %210 = arith.truncf %209 : vector<2x32xf32> to vector<2x32xbf16>
    %211 = arith.addf %191, %209 : vector<2x32xf32>
    %cst_41 = arith.constant dense<0.000000e+00> : vector<2x128xf32>
    %212 = tpu.matmul %210, %187, %cst_41 {dimension_numbers = #tpu.dot_dimension_numbers<[1], [0], [0], [1], [0, 0, 1, 1], [], []>} : vector<2x32xbf16>, vector<32x128xbf16>, vector<2x128xf32> -> vector<2x128xf32>
    %213 = vector.extract_strided_slice %186 {offsets = [2, 0], sizes = [2, 128], strides = [1, 1]} : vector<16x128xf32> to vector<2x128xf32>
    %214 = arith.addf %212, %213 : vector<2x128xf32>
    %215 = arith.negf %214 : vector<2x128xf32>
    %216 = math.exp %215 : vector<2x128xf32>
    %cst_42 = arith.constant 1.000000e+00 : f32
    %217 = vector.broadcast %cst_42 : f32 to vector<2x128xf32>
    %218 = arith.addf %217, %216 : vector<2x128xf32>
    %219 = arith.divf %217, %218 : vector<2x128xf32>
    %220 = math.tanh %214 : vector<2x128xf32>
    %221 = vector.extract_strided_slice %219 {offsets = [0, 0], sizes = [2, 32], strides = [1, 1]} : vector<2x128xf32> to vector<2x32xf32>
    %222 = vector.extract_strided_slice %219 {offsets = [0, 32], sizes = [2, 32], strides = [1, 1]} : vector<2x128xf32> to vector<2x32xf32>
    %223 = vector.extract_strided_slice %220 {offsets = [0, 64], sizes = [2, 32], strides = [1, 1]} : vector<2x128xf32> to vector<2x32xf32>
    %224 = vector.extract_strided_slice %219 {offsets = [0, 96], sizes = [2, 32], strides = [1, 1]} : vector<2x128xf32> to vector<2x32xf32>
    %225 = arith.mulf %222, %207 : vector<2x32xf32>
    %226 = arith.mulf %221, %223 : vector<2x32xf32>
    %227 = arith.addf %225, %226 : vector<2x32xf32>
    %228 = math.tanh %227 : vector<2x32xf32>
    %229 = arith.mulf %224, %228 : vector<2x32xf32>
    %230 = arith.truncf %229 : vector<2x32xf32> to vector<2x32xbf16>
    %231 = arith.addf %211, %229 : vector<2x32xf32>
    %cst_43 = arith.constant dense<0.000000e+00> : vector<2x128xf32>
    %232 = tpu.matmul %230, %187, %cst_43 {dimension_numbers = #tpu.dot_dimension_numbers<[1], [0], [0], [1], [0, 0, 1, 1], [], []>} : vector<2x32xbf16>, vector<32x128xbf16>, vector<2x128xf32> -> vector<2x128xf32>
    %233 = vector.extract_strided_slice %186 {offsets = [4, 0], sizes = [2, 128], strides = [1, 1]} : vector<16x128xf32> to vector<2x128xf32>
    %234 = arith.addf %232, %233 : vector<2x128xf32>
    %235 = arith.negf %234 : vector<2x128xf32>
    %236 = math.exp %235 : vector<2x128xf32>
    %cst_44 = arith.constant 1.000000e+00 : f32
    %237 = vector.broadcast %cst_44 : f32 to vector<2x128xf32>
    %238 = arith.addf %237, %236 : vector<2x128xf32>
    %239 = arith.divf %237, %238 : vector<2x128xf32>
    %240 = math.tanh %234 : vector<2x128xf32>
    %241 = vector.extract_strided_slice %239 {offsets = [0, 0], sizes = [2, 32], strides = [1, 1]} : vector<2x128xf32> to vector<2x32xf32>
    %242 = vector.extract_strided_slice %239 {offsets = [0, 32], sizes = [2, 32], strides = [1, 1]} : vector<2x128xf32> to vector<2x32xf32>
    %243 = vector.extract_strided_slice %240 {offsets = [0, 64], sizes = [2, 32], strides = [1, 1]} : vector<2x128xf32> to vector<2x32xf32>
    %244 = vector.extract_strided_slice %239 {offsets = [0, 96], sizes = [2, 32], strides = [1, 1]} : vector<2x128xf32> to vector<2x32xf32>
    %245 = arith.mulf %242, %227 : vector<2x32xf32>
    %246 = arith.mulf %241, %243 : vector<2x32xf32>
    %247 = arith.addf %245, %246 : vector<2x32xf32>
    %248 = math.tanh %247 : vector<2x32xf32>
    %249 = arith.mulf %244, %248 : vector<2x32xf32>
    %250 = arith.truncf %249 : vector<2x32xf32> to vector<2x32xbf16>
    %251 = arith.addf %231, %249 : vector<2x32xf32>
    %cst_45 = arith.constant dense<0.000000e+00> : vector<2x128xf32>
    %252 = tpu.matmul %250, %187, %cst_45 {dimension_numbers = #tpu.dot_dimension_numbers<[1], [0], [0], [1], [0, 0, 1, 1], [], []>} : vector<2x32xbf16>, vector<32x128xbf16>, vector<2x128xf32> -> vector<2x128xf32>
    %253 = vector.extract_strided_slice %186 {offsets = [6, 0], sizes = [2, 128], strides = [1, 1]} : vector<16x128xf32> to vector<2x128xf32>
    %254 = arith.addf %252, %253 : vector<2x128xf32>
    %255 = arith.negf %254 : vector<2x128xf32>
    %256 = math.exp %255 : vector<2x128xf32>
    %cst_46 = arith.constant 1.000000e+00 : f32
    %257 = vector.broadcast %cst_46 : f32 to vector<2x128xf32>
    %258 = arith.addf %257, %256 : vector<2x128xf32>
    %259 = arith.divf %257, %258 : vector<2x128xf32>
    %260 = math.tanh %254 : vector<2x128xf32>
    %261 = vector.extract_strided_slice %259 {offsets = [0, 0], sizes = [2, 32], strides = [1, 1]} : vector<2x128xf32> to vector<2x32xf32>
    %262 = vector.extract_strided_slice %259 {offsets = [0, 32], sizes = [2, 32], strides = [1, 1]} : vector<2x128xf32> to vector<2x32xf32>
    %263 = vector.extract_strided_slice %260 {offsets = [0, 64], sizes = [2, 32], strides = [1, 1]} : vector<2x128xf32> to vector<2x32xf32>
    %264 = vector.extract_strided_slice %259 {offsets = [0, 96], sizes = [2, 32], strides = [1, 1]} : vector<2x128xf32> to vector<2x32xf32>
    %265 = arith.mulf %262, %247 : vector<2x32xf32>
    %266 = arith.mulf %261, %263 : vector<2x32xf32>
    %267 = arith.addf %265, %266 : vector<2x32xf32>
    %268 = math.tanh %267 : vector<2x32xf32>
    %269 = arith.mulf %264, %268 : vector<2x32xf32>
    %270 = arith.truncf %269 : vector<2x32xf32> to vector<2x32xbf16>
    %271 = arith.addf %251, %269 : vector<2x32xf32>
    %cst_47 = arith.constant dense<0.000000e+00> : vector<2x128xf32>
    %272 = tpu.matmul %270, %187, %cst_47 {dimension_numbers = #tpu.dot_dimension_numbers<[1], [0], [0], [1], [0, 0, 1, 1], [], []>} : vector<2x32xbf16>, vector<32x128xbf16>, vector<2x128xf32> -> vector<2x128xf32>
    %273 = vector.extract_strided_slice %186 {offsets = [8, 0], sizes = [2, 128], strides = [1, 1]} : vector<16x128xf32> to vector<2x128xf32>
    %274 = arith.addf %272, %273 : vector<2x128xf32>
    %275 = arith.negf %274 : vector<2x128xf32>
    %276 = math.exp %275 : vector<2x128xf32>
    %cst_48 = arith.constant 1.000000e+00 : f32
    %277 = vector.broadcast %cst_48 : f32 to vector<2x128xf32>
    %278 = arith.addf %277, %276 : vector<2x128xf32>
    %279 = arith.divf %277, %278 : vector<2x128xf32>
    %280 = math.tanh %274 : vector<2x128xf32>
    %281 = vector.extract_strided_slice %279 {offsets = [0, 0], sizes = [2, 32], strides = [1, 1]} : vector<2x128xf32> to vector<2x32xf32>
    %282 = vector.extract_strided_slice %279 {offsets = [0, 32], sizes = [2, 32], strides = [1, 1]} : vector<2x128xf32> to vector<2x32xf32>
    %283 = vector.extract_strided_slice %280 {offsets = [0, 64], sizes = [2, 32], strides = [1, 1]} : vector<2x128xf32> to vector<2x32xf32>
    %284 = vector.extract_strided_slice %279 {offsets = [0, 96], sizes = [2, 32], strides = [1, 1]} : vector<2x128xf32> to vector<2x32xf32>
    %285 = arith.mulf %282, %267 : vector<2x32xf32>
    %286 = arith.mulf %281, %283 : vector<2x32xf32>
    %287 = arith.addf %285, %286 : vector<2x32xf32>
    %288 = math.tanh %287 : vector<2x32xf32>
    %289 = arith.mulf %284, %288 : vector<2x32xf32>
    %290 = arith.truncf %289 : vector<2x32xf32> to vector<2x32xbf16>
    %291 = arith.addf %271, %289 : vector<2x32xf32>
    %cst_49 = arith.constant dense<0.000000e+00> : vector<2x128xf32>
    %292 = tpu.matmul %290, %187, %cst_49 {dimension_numbers = #tpu.dot_dimension_numbers<[1], [0], [0], [1], [0, 0, 1, 1], [], []>} : vector<2x32xbf16>, vector<32x128xbf16>, vector<2x128xf32> -> vector<2x128xf32>
    %293 = vector.extract_strided_slice %186 {offsets = [10, 0], sizes = [2, 128], strides = [1, 1]} : vector<16x128xf32> to vector<2x128xf32>
    %294 = arith.addf %292, %293 : vector<2x128xf32>
    %295 = arith.negf %294 : vector<2x128xf32>
    %296 = math.exp %295 : vector<2x128xf32>
    %cst_50 = arith.constant 1.000000e+00 : f32
    %297 = vector.broadcast %cst_50 : f32 to vector<2x128xf32>
    %298 = arith.addf %297, %296 : vector<2x128xf32>
    %299 = arith.divf %297, %298 : vector<2x128xf32>
    %300 = math.tanh %294 : vector<2x128xf32>
    %301 = vector.extract_strided_slice %299 {offsets = [0, 0], sizes = [2, 32], strides = [1, 1]} : vector<2x128xf32> to vector<2x32xf32>
    %302 = vector.extract_strided_slice %299 {offsets = [0, 32], sizes = [2, 32], strides = [1, 1]} : vector<2x128xf32> to vector<2x32xf32>
    %303 = vector.extract_strided_slice %300 {offsets = [0, 64], sizes = [2, 32], strides = [1, 1]} : vector<2x128xf32> to vector<2x32xf32>
    %304 = vector.extract_strided_slice %299 {offsets = [0, 96], sizes = [2, 32], strides = [1, 1]} : vector<2x128xf32> to vector<2x32xf32>
    %305 = arith.mulf %302, %287 : vector<2x32xf32>
    %306 = arith.mulf %301, %303 : vector<2x32xf32>
    %307 = arith.addf %305, %306 : vector<2x32xf32>
    %308 = math.tanh %307 : vector<2x32xf32>
    %309 = arith.mulf %304, %308 : vector<2x32xf32>
    %310 = arith.truncf %309 : vector<2x32xf32> to vector<2x32xbf16>
    %311 = arith.addf %291, %309 : vector<2x32xf32>
    %cst_51 = arith.constant dense<0.000000e+00> : vector<2x128xf32>
    %312 = tpu.matmul %310, %187, %cst_51 {dimension_numbers = #tpu.dot_dimension_numbers<[1], [0], [0], [1], [0, 0, 1, 1], [], []>} : vector<2x32xbf16>, vector<32x128xbf16>, vector<2x128xf32> -> vector<2x128xf32>
    %313 = vector.extract_strided_slice %186 {offsets = [12, 0], sizes = [2, 128], strides = [1, 1]} : vector<16x128xf32> to vector<2x128xf32>
    %314 = arith.addf %312, %313 : vector<2x128xf32>
    %315 = arith.negf %314 : vector<2x128xf32>
    %316 = math.exp %315 : vector<2x128xf32>
    %cst_52 = arith.constant 1.000000e+00 : f32
    %317 = vector.broadcast %cst_52 : f32 to vector<2x128xf32>
    %318 = arith.addf %317, %316 : vector<2x128xf32>
    %319 = arith.divf %317, %318 : vector<2x128xf32>
    %320 = math.tanh %314 : vector<2x128xf32>
    %321 = vector.extract_strided_slice %319 {offsets = [0, 0], sizes = [2, 32], strides = [1, 1]} : vector<2x128xf32> to vector<2x32xf32>
    %322 = vector.extract_strided_slice %319 {offsets = [0, 32], sizes = [2, 32], strides = [1, 1]} : vector<2x128xf32> to vector<2x32xf32>
    %323 = vector.extract_strided_slice %320 {offsets = [0, 64], sizes = [2, 32], strides = [1, 1]} : vector<2x128xf32> to vector<2x32xf32>
    %324 = vector.extract_strided_slice %319 {offsets = [0, 96], sizes = [2, 32], strides = [1, 1]} : vector<2x128xf32> to vector<2x32xf32>
    %325 = arith.mulf %322, %307 : vector<2x32xf32>
    %326 = arith.mulf %321, %323 : vector<2x32xf32>
    %327 = arith.addf %325, %326 : vector<2x32xf32>
    %328 = math.tanh %327 : vector<2x32xf32>
    %329 = arith.mulf %324, %328 : vector<2x32xf32>
    %330 = arith.truncf %329 : vector<2x32xf32> to vector<2x32xbf16>
    %331 = arith.addf %311, %329 : vector<2x32xf32>
    %cst_53 = arith.constant dense<0.000000e+00> : vector<2x128xf32>
    %332 = tpu.matmul %330, %187, %cst_53 {dimension_numbers = #tpu.dot_dimension_numbers<[1], [0], [0], [1], [0, 0, 1, 1], [], []>} : vector<2x32xbf16>, vector<32x128xbf16>, vector<2x128xf32> -> vector<2x128xf32>
    %333 = vector.extract_strided_slice %186 {offsets = [14, 0], sizes = [2, 128], strides = [1, 1]} : vector<16x128xf32> to vector<2x128xf32>
    %334 = arith.addf %332, %333 : vector<2x128xf32>
    %335 = arith.negf %334 : vector<2x128xf32>
    %336 = math.exp %335 : vector<2x128xf32>
    %cst_54 = arith.constant 1.000000e+00 : f32
    %337 = vector.broadcast %cst_54 : f32 to vector<2x128xf32>
    %338 = arith.addf %337, %336 : vector<2x128xf32>
    %339 = arith.divf %337, %338 : vector<2x128xf32>
    %340 = math.tanh %334 : vector<2x128xf32>
    %341 = vector.extract_strided_slice %339 {offsets = [0, 0], sizes = [2, 32], strides = [1, 1]} : vector<2x128xf32> to vector<2x32xf32>
    %342 = vector.extract_strided_slice %339 {offsets = [0, 32], sizes = [2, 32], strides = [1, 1]} : vector<2x128xf32> to vector<2x32xf32>
    %343 = vector.extract_strided_slice %340 {offsets = [0, 64], sizes = [2, 32], strides = [1, 1]} : vector<2x128xf32> to vector<2x32xf32>
    %344 = vector.extract_strided_slice %339 {offsets = [0, 96], sizes = [2, 32], strides = [1, 1]} : vector<2x128xf32> to vector<2x32xf32>
    %345 = arith.mulf %342, %327 : vector<2x32xf32>
    %346 = arith.mulf %341, %343 : vector<2x32xf32>
    %347 = arith.addf %345, %346 : vector<2x32xf32>
    %348 = math.tanh %347 : vector<2x32xf32>
    %349 = arith.mulf %344, %348 : vector<2x32xf32>
    %350 = arith.addf %331, %349 : vector<2x32xf32>
    %c80 = arith.constant 80 : index
    %c0_55 = arith.constant 0 : index
    %351 = vector.load %arg2[%c80, %c0_55] : memref<192x256xf32, #tpu.memory_space<vmem>>, vector<32x64xf32>
    %c112 = arith.constant 112 : index
    %c0_56 = arith.constant 0 : index
    %352 = vector.load %arg2[%c112, %c0_56] : memref<192x256xf32, #tpu.memory_space<vmem>>, vector<1x64xf32>
    %c120 = arith.constant 120 : index
    %c0_57 = arith.constant 0 : index
    %353 = vector.load %arg2[%c120, %c0_57] : memref<192x256xf32, #tpu.memory_space<vmem>>, vector<64x4xf32>
    %c184 = arith.constant 184 : index
    %c0_58 = arith.constant 0 : index
    %354 = vector.load %arg2[%c184, %c0_58] : memref<192x256xf32, #tpu.memory_space<vmem>>, vector<1x4xf32>
    %cst_59 = arith.constant 1.250000e-01 : f32
    %355 = vector.broadcast %cst_59 : f32 to vector<2x32xf32>
    %356 = arith.mulf %350, %355 : vector<2x32xf32>
    %cst_60 = arith.constant dense<0.000000e+00> : vector<2x64xf32>
    %357 = tpu.matmul %356, %351, %cst_60 {dimension_numbers = #tpu.dot_dimension_numbers<[1], [0], [0], [1], [0, 0, 1, 1], [], []>} : vector<2x32xf32>, vector<32x64xf32>, vector<2x64xf32> -> vector<2x64xf32>
    %358 = vector.broadcast %352 : vector<1x64xf32> to vector<2x64xf32>
    %359 = arith.addf %357, %358 : vector<2x64xf32>
    %cst_61 = arith.constant 0.000000e+00 : f32
    %360 = vector.broadcast %cst_61 : f32 to vector<2x64xf32>
    %361 = arith.maximumf %359, %360 : vector<2x64xf32>
    %cst_62 = arith.constant dense<0.000000e+00> : vector<2x4xf32>
    %362 = tpu.matmul %361, %353, %cst_62 {dimension_numbers = #tpu.dot_dimension_numbers<[1], [0], [0], [1], [0, 0, 1, 1], [], []>} : vector<2x64xf32>, vector<64x4xf32>, vector<2x4xf32> -> vector<2x4xf32>
    %363 = vector.broadcast %354 : vector<1x4xf32> to vector<2x4xf32>
    %364 = arith.addf %362, %363 : vector<2x4xf32>
    %c0_63 = arith.constant 0 : index
    %c0_64 = arith.constant 0 : index
    %365 = vector.load %arg3[%c0_63, %c0_64] : memref<2x4xf32, #tpu.memory_space<vmem>>, vector<2x4xf32>
    tpu.vector_store %arg3[%c0_63, %c0_64], %364 {strides = array<i32>} : memref<2x4xf32, #tpu.memory_space<vmem>>, vector<2x4xf32>,
    return
  }
}

</mosaic_0001>

<bundles_post_ra>
// kernel: bilstm_model_forward.1
= control target key start
LH: loop header
LB: loop body
LE: loop exit
PB: predicated region body
PF: predicated region fallthrough
CT: control target
= control target key end

     0   :  { %8 = vsyncpa [#allocation3], 0  ;;  %s2909_s0 = inlined_call_operand.vmem [shape: s32[32,1], index: 0, kind: input, shape index: {}]   ;;  %s2910_s1 = inlined_call_operand.hbm [shape: bf16[288,256], index: 1, kind: input, shape index: {}]   ;;  %s2911_s2 = inlined_call_operand.hbm [shape: f32[192,256], index: 2, kind: input, shape index: {}]   ;;  %s2912_s3 = inlined_call_operand.hbm [shape: f32[2,4], index: 3, kind: output, shape index: {}]  }
   0x1   :  { %9 = vsyncpa [#allocation6], 0 }
   0x2   :  { %10 = vsyncpa [#allocation4], 0  ;;  %s2512_s12 = smov [#allocation2]  }
   0x3   :  { %s18_s13 = sshll.u32 %s2512_s12, 4  ;;  %s19_s13 = int_to_ptr.vmem [resolvable:$true] %s18_s13 }
   0x4   :  { %s2454_s14 = scalar_lea.vmem %s19_s13, 4608  ;;  %p2459_p1 = scmp.lt.s32.totalorder %s19_s13, %s19_s13 }
   0x5   :  { %p2455_p0 = scmp.ne.s32.totalorder %s19_s13, %s2454_s14  ;;  %p2460_p2 = scmp.lt.s32.totalorder %s2454_s14, %s2454_s14 }
   0x7   :  { %p2461_p3 = por %p2460_p2, %p2459_p1 }
   0x9   :  { %p2462_p4 = pnand %p2461_p3, %p2455_p0 }
   0xb   :  { %2465 = shalt.err (!%p2462_p4)
}
   0xc   :  { %s2513_s15 = smov 128   ;;  %s2514_s16 = smov 8  }
   0xd   :  { %24 = dma.hbm_to_vmem [thread:$0]  %s2910_s1, 4608, %s19_s13, [#allocation3], %s2513_s15, %s2513_s15, %s2514_s16  }
   0xe   :  { %s2515_s19 = smov [#allocation5]  }
   0xf   :  { %s30_s20 = sshll.u32 %s2515_s19, 4  ;;  %s31_s20 = int_to_ptr.vmem [resolvable:$true] %s30_s20 }
  0x10   :  { %s2474_s21 = scalar_lea.vmem %s31_s20, 6144  ;;  %p2479_p6 = scmp.lt.s32.totalorder %s31_s20, %s31_s20 }
  0x11   :  { %p2475_p5 = scmp.ne.s32.totalorder %s31_s20, %s2474_s21  ;;  %p2480_p7 = scmp.lt.s32.totalorder %s2474_s21, %s2474_s21 }
  0x13   :  { %p2481_p8 = por %p2480_p7, %p2479_p6 }
  0x15   :  { %p2482_p9 = pnand %p2481_p8, %p2475_p5 }
  0x17   :  { %2485 = shalt.err (!%p2482_p9)
}
  0x18   :  { %s2516_s22 = smov 256   ;;  %s2517_s23 = smov 16  }
  0x19   :  { %36 = dma.hbm_to_vmem [thread:$0]  %s2911_s2, 6144, %s31_s20, [#allocation6], %s2516_s22, %s2516_s22, %s2517_s23  }
  0x1a   :  { %2506 = dma.done.wait [#allocation3], 4608  }
  0x1b   :  { %2507 = vsyncadd [#allocation3], 4294962688 }
  0x1c   :  { %2508 = dma.done.wait [#allocation6], 6144  }
  0x1d   :  { %2509 = vsyncadd [#allocation6], 4294961152  ;;  %v2518_v0 = vmov 0   ;;  %v54_v1 = vld [vmem:[%s2909_s0 + $0x10] sm:$0xff]  ;;  %v52_v2 = vld [vmem:[%s2909_s0] sm:$0xff]  ;;  %v56_v14 = vlaneseq  ;;  %vm78_vm0 = vcmask 523264  }
  0x1e   :  { %2251 = vset.pattern.permute.xlu1 %v2518_v0  ;;  %2250 = vset.pattern.permute.xlu0 %v2518_v0  ;;  %v51_v3 = vld [vmem:[#allocation5 + $0x90] sm:$0xff]  ;;  %v50_v4 = vld [vmem:[#allocation5 + $0x80] sm:$0xff]  ;;  %v55_v5 = vld [vmem:[%s2909_s0 + $0x18] sm:$0xff]  ;;  %v2519_v18 = vmov 0.0   ;;  %vm207_vm5 = vcmask 261120   ;;  %vm976_vm6 = vcmask 1040384  }
  0x1f   :  { %243 = vmatprep.mubr.bf16.mxu1 %v2518_v0  ;;  %65 = vperm.xlu1 %2251, %v54_v1   ;;  %v53_v6 = vld [vmem:[%s2909_s0 + $0x8] sm:$0xff]  ;;  %v49_v7 = vld [vmem:[#allocation5 + $0x70] sm:$0xff]  ;;  %v48_v8 = vld [vmem:[#allocation5 + $0x60] sm:$0xff]  ;;  %v57_v15 = vand.u32 127, %v56_v14  ;;  %v322_v50 = vshrl.u32 %v56_v14, 7  ;;  %s2520_s0 = smov 64  }
  0x20   :  { %59 = vperm.xlu0 %2250, %v52_v2   ;;  %2098 = vmatprep.subr.mxu0 %v51_v3  ;;  %v47_v9 = vld [vmem:[#allocation5 + $0x50] sm:$0xff]  ;;  %v46_v10 = vld [vmem:[#allocation5 + $0x40] sm:$0xff]  ;;  %vm980_vm7 = vcmask 1041408   ;;  %vm983_vm8 = vcmask 1042432   ;;  %vm986_vm9 = vcmask 1043456   ;;  %vm989_vm10 = vcmask 1044480  }
  0x21   :  { %2099 = vmatpush3.msra.mxu0 %v51_v3  ;;  %v45_v11 = vld [vmem:[#allocation5 + $0x30] sm:$0xff]  ;;  %v44_v12 = vld [vmem:[#allocation5 + $0x20] sm:$0xff]  ;;  %v323_v53 = vsub.s32 0, %v322_v50  ;;  %v327_v62 = vsub.s32 1, %v322_v50  ;;  %vm992_vm11 = vcmask 1045504   ;;  %vm2521_vm12 = vmmov 0  }
  0x22   :  { %2100 = vmatprep.subr.mxu0 %v50_v4  ;;  %v2565_v13 = vld [vmem:[#allocation2 + $0x74] ss:$8 sps:$4 sm:$0xff]   ;;  %v2578_v25 = vld [vmem:[#allocation2 + $0x70] ss:$8 sps:$4 sm:$0xff]   ;;  %v2581_v28 = vld [vmem:[#allocation2 + $0x64] ss:$8 sps:$4 sm:$0xff]  }
  0x23   :  { %68 = vperm.xlu1 %2251, %v55_v5   ;;  %2101 = vmatpush3.msra.mxu0 %v50_v4  ;;  %v2254_v26 = vld [vmem:[#allocation2 + $0x34] ss:$8 sps:$4 sm:$0xff]   ;;  %v2257_v27 = vld [vmem:[#allocation2 + $0x30] ss:$8 sps:$4 sm:$0xff]   ;;  %v2583_v29 = vld [vmem:[#allocation2 + $0x60] ss:$8 sps:$4 sm:$0xff]  }
  0x24   :  { %62 = vperm.xlu0 %2250, %v53_v6   ;;  %2102 = vmatprep.subr.mxu0 %v49_v7  ;;  %v2260_v30 = vld [vmem:[#allocation2 + $0x24] ss:$8 sps:$4 sm:$0xff]   ;;  %v2263_v31 = vld [vmem:[#allocation2 + $0x20] ss:$8 sps:$4 sm:$0xff]   ;;  %v2587_v32 = vld [vmem:[#allocation2 + $0x54] ss:$8 sps:$4 sm:$0xff]  }
  0x25   :  { %2103 = vmatpush3.msra.mxu0 %v49_v7  ;;  %223 = vmatprep.subr.bf16.mxu1 %v2254_v26  ;;  %v2589_v33 = vld [vmem:[#allocation2 + $0x50] ss:$8 sps:$4 sm:$0xff]   ;;  %v2268_v34 = vld [vmem:[#allocation2 + $0x14] ss:$8 sps:$4 sm:$0xff]   ;;  %v2593_v35 = vld [vmem:[#allocation2 + $0x44] ss:$8 sps:$4 sm:$0xff]  }
  0x26   :  { %2104 = vmatprep.subr.mxu0 %v48_v8  ;;  %224 = vmatpush1.bf16.msra.mxu1 %v2257_v27  ;;  %v2595_v36 = vld [vmem:[#allocation2 + $0x40] ss:$8 sps:$4 sm:$0xff]   ;;  %v2266_v41 = vld [vmem:[#allocation2 + $0x10] ss:$8 sps:$4 sm:$0xff]   ;;  %v2274_v43 = vld [vmem:[#allocation2 + $0x4] ss:$8 sps:$4 sm:$0xff]  }
  0x27   :  { %2105 = vmatpush3.msra.mxu0 %v48_v8  ;;  %225 = vmatprep.subr.bf16.mxu1 %v2260_v30  ;;  %v2272_v44 = vld [vmem:[#allocation2] ss:$8 sps:$4 sm:$0xff]   ;;  %vm995_vm13 = vcmask 1046528   ;;  %s2522_s5 = smov 32   ;;  %s2523_s6 = smov [#allocation7]   ;;  %vm1946_vm14 = vcmask 25600  }
  0x28   :  { %2106 = vmatprep.subr.mxu0 %v47_v9  ;;  %v186_v55 = vld [vmem:[#allocation5] ss:$8 sm:$0x3]  ;;  %s1954_s7 = sshll.u32 %s2523_s6, 4  ;;  %s1955_s7 = int_to_ptr.vmem [resolvable:$true] %s1954_s7 }
  0x29   :  { %2107 = vmatpush3.msra.mxu0 %v47_v9  ;;  %v324_v57 = vrot.slane %v186_v55, %v323_v53  ;;  %v328_v5 = vrot.slane %v186_v55, %v327_v62  ;;  %s2486_s8 = scalar_lea.vmem %s1955_s7, 32  ;;  %p2491_p11 = scmp.lt.s32.totalorder %s1955_s7, %s1955_s7 }
  0x2a   :  { %2108 = vmatprep.subr.mxu0 %v46_v10  ;;  %226 = vmatpush1.bf16.msra.mxu1 %v2263_v31  ;;  %p2487_p10 = scmp.ne.s32.totalorder %s1955_s7, %s2486_s8  ;;  %p2492_p12 = scmp.lt.s32.totalorder %s2486_s8, %s2486_s8 }
  0x2b   :  { %2109 = vmatpush3.msra.mxu0 %v46_v10  ;;  %289 = vmatprep.subr.bf16.mxu1 %v2268_v34 }
  0x2c   :  { %2110 = vmatprep.subr.mxu0 %v45_v11  ;;  %p2493_p13 = por %p2492_p12, %p2491_p11 }
  0x2d   :  { %2111 = vmatpush3.msra.mxu0 %v45_v11 }
  0x2e   :  { %2112 = vmatprep.subr.mxu0 %v44_v12  ;;  %p2494_p0 = pnand %p2493_p13, %p2487_p10 }
  0x2f   :  { %2113 = vmatpush3.msra.mxu0 %v44_v12 }
  0x30   :  { %394 = vmatprep.subr.bf16.mxu0 %v2565_v13 }
  0x9a   :  { %v66_v16 = vpop.permute.xlu1 %65 }
  0x9b   :  { %v60_v17 = vpop.permute.xlu0 %59  ;;  %vm72_vm2 = vcmp.eq.s32.totalorder %v66_v16, %v57_v15 }
  0x9c   :  { %vm70_vm1 = vcmp.eq.s32.totalorder %v60_v17, %v57_v15  ;;  %v76_v22 = vsel %vm72_vm2, 1.0, %v2519_v18 }
  0x9d   :  { %v74_v19 = vsel %vm70_vm1, 1.0, %v2519_v18 }
  0x9e   :  { %2114 = vmatprep.mubr.msk.f32.mxu0 %vm78_vm0, %v74_v19  ;;  %v69_v20 = vpop.permute.xlu1 %68 }
  0x9f   :  { %v63_v21 = vpop.permute.xlu0 %62  ;;  %vm73_vm4 = vcmp.eq.s32.totalorder %v69_v20, %v57_v15 }
  0xa0   :  { %vm71_vm3 = vcmp.eq.s32.totalorder %v63_v21, %v57_v15  ;;  %v77_v24 = vsel %vm73_vm4, 1.0, %v2519_v18 }
  0xa1   :  { %v75_v23 = vsel %vm71_vm3, 1.0, %v2519_v18 }
  0xa2   :  { %2115 = vmatmul.mubr.msk.f32.vlgmr.msra.gmra.mxu0 %vm78_vm0, %v75_v23 }
  0xa3   :  { %2117 = vmatprep.mubr.msk.f32.mxu0 %vm78_vm0, %v76_v22  ;;  %395 = vmatpush1.bf16.msra.mxu0 %v2578_v25 }
  0xa4   :  { %396 = vmatprep.subr.bf16.mxu0 %v2581_v28 }
  0xa6   :  { %2118 = vmatmul.mubr.msk.f32.gmra.mxu0 %vm78_vm0, %v77_v24 }
  0xa7   :  { %418 = vmatprep.mubr.bf16.mxu0 %v2518_v0  ;;  %397 = vmatpush1.bf16.msra.mxu0 %v2583_v29 }
  0xa8   :  { %398 = vmatprep.subr.bf16.mxu0 %v2587_v32 }
  0xab   :  { %399 = vmatpush1.bf16.msra.mxu0 %v2589_v33 }
  0xac   :  { %400 = vmatprep.subr.bf16.mxu0 %v2593_v35 }
  0xaf   :  { %401 = vmatpush1.bf16.msra.mxu0 %v2595_v36 }
  0xb0   :  { %544 = vmatprep.subr.bf16.mxu0 %v2565_v13 }
  0xb2   :  { %419 = vmatmul.mubr.bf16.vlgmr.msra.gmra.mxu0 %v2518_v0 }
  0xb3   :  { %545 = vmatpush1.bf16.msra.mxu0 %v2578_v25  ;;  %568 = vmatprep.mubr.bf16.mxu0 %v2518_v0 }
  0xb4   :  { %546 = vmatprep.subr.bf16.mxu0 %v2581_v28 }
  0xb7   :  { %547 = vmatpush1.bf16.msra.mxu0 %v2583_v29 }
  0xb8   :  { %548 = vmatprep.subr.bf16.mxu0 %v2587_v32 }
  0xbb   :  { %549 = vmatpush1.bf16.msra.mxu0 %v2589_v33 }
  0xbc   :  { %550 = vmatprep.subr.bf16.mxu0 %v2593_v35 }
  0xbf   :  { %551 = vmatpush1.bf16.msra.mxu0 %v2595_v36 }
  0xc0   :  { %688 = vmatprep.subr.bf16.mxu0 %v2565_v13 }
 0x162   :  { %v2116_v37 = vpop.f32.mrf.mxu0 }
 0x164   :  { %v157_v38 = vpop.f32.mrf.mxu0 }
 0x165   :  { %v176_v45 = vpack.c.bf16 %v2116_v37, %v157_v38 }
 0x166   :  { %v2119_v39 = vpop.f32.mrf.mxu0 }
 0x168   :  { %v167_v40 = vpop.f32.mrf.mxu0 }
 0x169   :  { %v177_v42 = vpack.c.bf16 %v2119_v39, %v167_v40 }
 0x16b   :  { %1972 = vmatmul.mubr.msk.bf16.vlgmr.msra.gmra.mxu1 %vm207_vm5, %v177_v42 }
 0x16c   :  { %290 = vmatpush1.bf16.msra.mxu1 %v2266_v41  ;;  %309 = vmatprep.mubr.bf16.mxu1 %v2518_v0 }
 0x16d   :  { %291 = vmatprep.subr.bf16.mxu1 %v2274_v43 }
 0x170   :  { %292 = vmatpush1.bf16.msra.mxu1 %v2272_v44 }
 0x171   :  { %470 = vmatprep.subr.bf16.mxu1 %v2565_v13 }
 0x172   :  { %v420_v46 = vpop.f32.mrf.mxu0 }
 0x173   :  { %1977 = vmatmul.mubr.msk.bf16.vlgmr.msra.gmra.mxu1 %vm207_vm5, %v176_v45 }
 0x174   :  { %471 = vmatpush1.bf16.msra.mxu1 %v2578_v25  ;;  %494 = vmatprep.mubr.bf16.mxu1 %v2518_v0  ;;  %v422_v47 = vpop.f32.mrf.mxu0 }
 0x175   :  { %472 = vmatprep.subr.bf16.mxu1 %v2581_v28 }
 0x176   :  { %v424_v48 = vpop.f32.mrf.mxu0 }
 0x178   :  { %473 = vmatpush1.bf16.msra.mxu1 %v2583_v29  ;;  %v425_v49 = vpop.f32.mrf.mxu0 }
 0x179   :  { %474 = vmatprep.subr.bf16.mxu1 %v2587_v32 }
 0x17c   :  { %475 = vmatpush1.bf16.msra.mxu1 %v2589_v33 }
 0x17d   :  { %476 = vmatprep.subr.bf16.mxu1 %v2593_v35 }
 0x180   :  { %477 = vmatpush1.bf16.msra.mxu1 %v2595_v36 }
 0x181   :  { %618 = vmatprep.subr.bf16.mxu1 %v2565_v13 }
 0x22b   :  { %v245_v51 = vpop.f32.mrf.mxu1 }
 0x22d   :  { %v247_v52 = vpop.f32.mrf.mxu1 }
 0x22f   :  { %v249_v54 = vpop.f32.mrf.mxu1 }
 0x231   :  { %v251_v56 = vpop.f32.mrf.mxu1 }
 0x233   :  { %v311_v58 = vpop.f32.mrf.mxu1 }
 0x234   :  { %v312_v59 = vadd.f32 %v311_v58, %v245_v51 }
 0x235   :  { %v313_v60 = vpop.f32.mrf.mxu1 }
 0x236   :  { %v2624_v61 = vadd.f32 %v324_v57, %v312_v59  ;;  %v314_v9 = vadd.f32 %v313_v60, %v247_v52 }
 0x237   :  { %v315_v63 = vpop.f32.mrf.mxu1 }
 0x238   :  { %v421_v1 = vadd.f32 %v420_v46, %v2624_v61  ;;  %v316_v2 = vadd.f32 %v315_v63, %v249_v54  ;;  %v2631_v10 = vadd.f32 %v328_v5, %v314_v9  ;;  %v455_v37 = vrot.slane %v2624_v61, 2 }
 0x239   :  { %v317_v3 = vpop.f32.mrf.mxu1  ;;  %v529_v63 = vrot.slane %v2624_v61, 4 }
 0x23a   :  { %v1986_v4 = vmul.f32 -1.442695, %v421_v1  ;;  %v2627_v6 = vadd.f32 %v324_v57, %v316_v2  ;;  %v318_v7 = vadd.f32 %v317_v3, %v251_v56  ;;  %v423_v11 = vadd.f32 %v422_v47, %v2631_v10 }
 0x23b   :  { %v456_v44 = vrot.slane %v2631_v10, 2  ;;  %v530_v9 = vrot.slane %v2631_v10, 4 }
 0x23c   :  { %2286 = vpow2.f32 %v1986_v4  ;;  %v2629_v8 = vadd.f32 %v328_v5, %v318_v7  ;;  %v1987_v19 = vmul.f32 -1.442695, %v423_v11 }
 0x23d   :  { %2288 = vtanh.f32 %v423_v11 }
 0x249   :  { %v2287_v12 = vpop.eup %2286 }
 0x24a   :  { %v433_v14 = vadd.f32 1.0, %v2287_v12  ;;  %v2289_v15 = vpop.eup %2288 }
 0x24c   :  { %2290 = vrcp.f32 %v433_v14 }
 0x24d   :  { %2292 = vpow2.f32 %v1987_v19 }
 0x259   :  { %v2291_v16 = vpop.eup %2290 }
 0x25a   :  { %v441_v17 = vmul.f32 %v2291_v16, %v2289_v15  ;;  %v2293_v20 = vpop.eup %2292  ;;  %v440_v22 = vmul.f32 0.0, %v2291_v16 }
 0x25b   :  { %v434_v21 = vadd.f32 1.0, %v2293_v20 }
 0x25c   :  { %443 = vrot.lane.b32.xlu0 %v441_v17, %s2520_s0 }
 0x25d   :  { %2294 = vrcp.f32 %v434_v21 }
 0x26a   :  { %v2295_v26 = vpop.eup %2294 }
 0x2ce   :  { %v444_v23 = vpop.permute.xlu0 %443 }
 0x2cf   :  { %v446_v24 = vadd.f32 %v444_v23, %v440_v22 }
 0x2d1   :  { %2296 = vtanh.f32 %v446_v24 }
 0x2de   :  { %v2297_v27 = vpop.eup %2296 }
 0x2df   :  { %v448_v30 = vmul.f32 %v2297_v27, %v2295_v26 }
 0x2e1   :  { %v2635_v31 = vpack.c.bf16 %v448_v30, %v448_v30 }
 0x2e3   :  { %451 = vrot.lane.b32.xlu1 %v2635_v31, %s2520_s0 }
 0x355   :  { %v452_v34 = vpop.permute.xlu1 %451 }
 0x356   :  { %1988 = vmatmul.mubr.msk.bf16.vlgmr.msra.gmra.mxu1 %vm78_vm0, %v452_v34 }
 0x357   :  { %619 = vmatpush1.bf16.msra.mxu1 %v2578_v25  ;;  %642 = vmatprep.mubr.bf16.mxu1 %v2518_v0 }
 0x358   :  { %620 = vmatprep.subr.bf16.mxu1 %v2581_v28 }
 0x35b   :  { %621 = vmatpush1.bf16.msra.mxu1 %v2583_v29 }
 0x35c   :  { %622 = vmatprep.subr.bf16.mxu1 %v2587_v32 }
 0x35f   :  { %623 = vmatpush1.bf16.msra.mxu1 %v2589_v33 }
 0x360   :  { %624 = vmatprep.subr.bf16.mxu1 %v2593_v35 }
 0x363   :  { %625 = vmatpush1.bf16.msra.mxu1 %v2595_v36 }
 0x364   :  { %764 = vmatprep.subr.bf16.mxu1 %v2565_v13 }
 0x416   :  { %v496_v38 = vpop.f32.mrf.mxu1 }
 0x417   :  { %v497_v39 = vadd.f32 %v496_v38, %v455_v37 }
 0x418   :  { %v498_v40 = vpop.f32.mrf.mxu1 }
 0x419   :  { %v1989_v41 = vmul.f32 -1.442695, %v497_v39  ;;  %v499_v45 = vadd.f32 %v498_v40, %v456_v44 }
 0x41a   :  { %v500_v42 = vpop.f32.mrf.mxu1 }
 0x41b   :  { %2298 = vpow2.f32 %v1989_v41  ;;  %v1990_v51 = vmul.f32 -1.442695, %v499_v45  ;;  %v603_v42 = vrot.slane %v2624_v61, 6 }
 0x41c   :  { %v501_v43 = vpop.f32.mrf.mxu1  ;;  %2300 = vtanh.f32 %v499_v45 }
 0x428   :  { %v2299_v46 = vpop.eup %2298 }
 0x429   :  { %v509_v47 = vadd.f32 1.0, %v2299_v46  ;;  %v2301_v48 = vpop.eup %2300 }
 0x42b   :  { %2302 = vrcp.f32 %v509_v47 }
 0x42c   :  { %2304 = vpow2.f32 %v1990_v51 }
 0x438   :  { %v2303_v49 = vpop.eup %2302 }
 0x439   :  { %v517_v50 = vmul.f32 %v2303_v49, %v2301_v48  ;;  %v2305_v52 = vpop.eup %2304  ;;  %v516_v54 = vmul.f32 %v2303_v49, %v446_v24  ;;  %v604_v49 = vrot.slane %v2631_v10, 6 }
 0x43a   :  { %v510_v53 = vadd.f32 1.0, %v2305_v52 }
 0x43b   :  { %519 = vrot.lane.b32.xlu0 %v517_v50, %s2520_s0 }
 0x43c   :  { %2306 = vrcp.f32 %v510_v53 }
 0x449   :  { %v2307_v57 = vpop.eup %2306 }
 0x4ad   :  { %v520_v55 = vpop.permute.xlu0 %519 }
 0x4ae   :  { %v522_v56 = vadd.f32 %v520_v55, %v516_v54 }
 0x4b0   :  { %2308 = vtanh.f32 %v522_v56 }
 0x4bd   :  { %v2309_v58 = vpop.eup %2308 }
 0x4be   :  { %v524_v59 = vmul.f32 %v2309_v58, %v2307_v57 }
 0x4c0   :  { %v2652_v60 = vpack.c.bf16 %v524_v59, %v524_v59 }
 0x4c2   :  { %527 = vrot.lane.b32.xlu1 %v2652_v60, %s2520_s0  ;;  %v968_v34 = vrot.slane %v2652_v60, 7 }
 0x4c4   :  { %v979_v39 = vsel %vm976_vm6, %v2635_v31, %v968_v34 }
 0x534   :  { %v528_v62 = vpop.permute.xlu1 %527 }
 0x535   :  { %1991 = vmatmul.mubr.msk.bf16.vlgmr.msra.gmra.mxu0 %vm78_vm0, %v528_v62 }
 0x536   :  { %689 = vmatpush1.bf16.msra.mxu0 %v2578_v25  ;;  %712 = vmatprep.mubr.bf16.mxu0 %v2518_v0 }
 0x537   :  { %690 = vmatprep.subr.bf16.mxu0 %v2581_v28 }
 0x53a   :  { %691 = vmatpush1.bf16.msra.mxu0 %v2583_v29 }
 0x53b   :  { %692 = vmatprep.subr.bf16.mxu0 %v2587_v32 }
 0x53e   :  { %693 = vmatpush1.bf16.msra.mxu0 %v2589_v33 }
 0x53f   :  { %694 = vmatprep.subr.bf16.mxu0 %v2593_v35 }
 0x542   :  { %695 = vmatpush1.bf16.msra.mxu0 %v2595_v36 }
 0x543   :  { %838 = vmatprep.subr.bf16.mxu0 %v2565_v13 }
 0x5f5   :  { %v570_v1 = vpop.f32.mrf.mxu0 }
 0x5f6   :  { %v571_v2 = vadd.f32 %v570_v1, %v529_v63 }
 0x5f7   :  { %v572_v3 = vpop.f32.mrf.mxu0 }
 0x5f8   :  { %v1992_v4 = vmul.f32 -1.442695, %v571_v2  ;;  %v573_v11 = vadd.f32 %v572_v3, %v530_v9 }
 0x5f9   :  { %v574_v5 = vpop.f32.mrf.mxu0 }
 0x5fa   :  { %2310 = vpow2.f32 %v1992_v4  ;;  %v1993_v19 = vmul.f32 -1.442695, %v573_v11 }
 0x5fb   :  { %v575_v7 = vpop.f32.mrf.mxu0  ;;  %2312 = vtanh.f32 %v573_v11 }
 0x607   :  { %v2311_v12 = vpop.eup %2310 }
 0x608   :  { %v583_v14 = vadd.f32 1.0, %v2311_v12  ;;  %v2313_v15 = vpop.eup %2312 }
 0x60a   :  { %2314 = vrcp.f32 %v583_v14 }
 0x60b   :  { %2316 = vpow2.f32 %v1993_v19 }
 0x617   :  { %v2315_v16 = vpop.eup %2314 }
 0x618   :  { %v591_v17 = vmul.f32 %v2315_v16, %v2313_v15  ;;  %v2317_v20 = vpop.eup %2316  ;;  %v590_v22 = vmul.f32 %v2315_v16, %v522_v56 }
 0x619   :  { %v584_v21 = vadd.f32 1.0, %v2317_v20 }
 0x61a   :  { %593 = vrot.lane.b32.xlu0 %v591_v17, %s2520_s0 }
 0x61b   :  { %2318 = vrcp.f32 %v584_v21 }
 0x628   :  { %v2319_v26 = vpop.eup %2318 }
 0x68c   :  { %v594_v23 = vpop.permute.xlu0 %593 }
 0x68d   :  { %v596_v24 = vadd.f32 %v594_v23, %v590_v22 }
 0x68f   :  { %2320 = vtanh.f32 %v596_v24 }
 0x69c   :  { %v2321_v27 = vpop.eup %2320 }
 0x69d   :  { %v598_v30 = vmul.f32 %v2321_v27, %v2319_v26 }
 0x69f   :  { %v2670_v37 = vpack.c.bf16 %v598_v30, %v598_v30 }
 0x6a1   :  { %601 = vrot.lane.b32.xlu1 %v2670_v37, %s2520_s0  ;;  %v969_v38 = vrot.slane %v2670_v37, 6 }
 0x6a3   :  { %v982_v40 = vsel %vm980_vm7, %v979_v39, %v969_v38 }
 0x713   :  { %v602_v41 = vpop.permute.xlu1 %601 }
 0x714   :  { %1994 = vmatmul.mubr.msk.bf16.vlgmr.msra.gmra.mxu1 %vm78_vm0, %v602_v41 }
 0x715   :  { %765 = vmatpush1.bf16.msra.mxu1 %v2578_v25  ;;  %788 = vmatprep.mubr.bf16.mxu1 %v2518_v0 }
 0x716   :  { %766 = vmatprep.subr.bf16.mxu1 %v2581_v28 }
 0x719   :  { %767 = vmatpush1.bf16.msra.mxu1 %v2583_v29 }
 0x71a   :  { %768 = vmatprep.subr.bf16.mxu1 %v2587_v32 }
 0x71d   :  { %769 = vmatpush1.bf16.msra.mxu1 %v2589_v33 }
 0x71e   :  { %770 = vmatprep.subr.bf16.mxu1 %v2593_v35 }
 0x721   :  { %771 = vmatpush1.bf16.msra.mxu1 %v2595_v36 }
 0x722   :  { %912 = vmatprep.subr.bf16.mxu1 %v2565_v13 }
 0x7d4   :  { %v644_v43 = vpop.f32.mrf.mxu1 }
 0x7d5   :  { %v645_v44 = vadd.f32 %v644_v43, %v603_v42 }
 0x7d6   :  { %v646_v45 = vpop.f32.mrf.mxu1 }
 0x7d7   :  { %v1995_v46 = vmul.f32 -1.442695, %v645_v44  ;;  %v647_v50 = vadd.f32 %v646_v45, %v604_v49  ;;  %v749_v44 = vrot.slane %v2627_v6, 2 }
 0x7d8   :  { %v648_v47 = vpop.f32.mrf.mxu1 }
 0x7d9   :  { %2322 = vpow2.f32 %v1995_v46  ;;  %v1996_v13 = vmul.f32 -1.442695, %v647_v50 }
 0x7da   :  { %v649_v48 = vpop.f32.mrf.mxu1  ;;  %2324 = vtanh.f32 %v647_v50 }
 0x7e6   :  { %v2323_v51 = vpop.eup %2322 }
 0x7e7   :  { %v657_v52 = vadd.f32 1.0, %v2323_v51  ;;  %v2325_v53 = vpop.eup %2324 }
 0x7e9   :  { %2326 = vrcp.f32 %v657_v52 }
 0x7ea   :  { %2328 = vpow2.f32 %v1996_v13 }
 0x7f6   :  { %v2327_v54 = vpop.eup %2326 }
 0x7f7   :  { %v665_v55 = vmul.f32 %v2327_v54, %v2325_v53  ;;  %v2329_v61 = vpop.eup %2328  ;;  %v664_v57 = vmul.f32 %v2327_v54, %v596_v24 }
 0x7f8   :  { %v658_v56 = vadd.f32 1.0, %v2329_v61 }
 0x7f9   :  { %667 = vrot.lane.b32.xlu0 %v665_v55, %s2520_s0 }
 0x7fa   :  { %2330 = vrcp.f32 %v658_v56 }
 0x807   :  { %v2331_v10 = vpop.eup %2330 }
 0x86b   :  { %v668_v58 = vpop.permute.xlu0 %667 }
 0x86c   :  { %v670_v59 = vadd.f32 %v668_v58, %v664_v57 }
 0x86e   :  { %2332 = vtanh.f32 %v670_v59 }
 0x87b   :  { %v2333_v62 = vpop.eup %2332 }
 0x87c   :  { %v672_v63 = vmul.f32 %v2333_v62, %v2331_v10 }
 0x87e   :  { %v2691_v1 = vpack.c.bf16 %v672_v63, %v672_v63  ;;  %v823_v63 = vrot.slane %v2627_v6, 4 }
 0x880   :  { %675 = vrot.lane.b32.xlu1 %v2691_v1, %s2520_s0  ;;  %v970_v2 = vrot.slane %v2691_v1, 5 }
 0x882   :  { %v985_v3 = vsel %vm983_vm8, %v982_v40, %v970_v2 }
 0x8f2   :  { %v676_v4 = vpop.permute.xlu1 %675 }
 0x8f3   :  { %1997 = vmatmul.mubr.msk.bf16.vlgmr.msra.gmra.mxu0 %vm78_vm0, %v676_v4 }
 0x8f4   :  { %839 = vmatpush1.bf16.msra.mxu0 %v2578_v25  ;;  %862 = vmatprep.mubr.bf16.mxu0 %v2518_v0 }
 0x8f5   :  { %840 = vmatprep.subr.bf16.mxu0 %v2581_v28 }
 0x8f8   :  { %841 = vmatpush1.bf16.msra.mxu0 %v2583_v29 }
 0x8f9   :  { %842 = vmatprep.subr.bf16.mxu0 %v2587_v32 }
 0x8fc   :  { %843 = vmatpush1.bf16.msra.mxu0 %v2589_v33 }
 0x8fd   :  { %844 = vmatprep.subr.bf16.mxu0 %v2593_v35 }
 0x900   :  { %845 = vmatpush1.bf16.msra.mxu0 %v2595_v36 }
 0x901   :  { %2120 = vmatprep.subr.bf16.mxu0 %v2519_v18 }
 0x9b3   :  { %v714_v5 = vpop.f32.mrf.mxu0 }
 0x9b4   :  { %v715_v7 = vadd.f32 %v714_v5, %v2627_v6 }
 0x9b5   :  { %v716_v9 = vpop.f32.mrf.mxu0 }
 0x9b6   :  { %v1998_v11 = vmul.f32 -1.442695, %v715_v7  ;;  %v717_v15 = vadd.f32 %v716_v9, %v2629_v8 }
 0x9b7   :  { %v718_v12 = vpop.f32.mrf.mxu0 }
 0x9b8   :  { %2334 = vpow2.f32 %v1998_v11  ;;  %v1999_v22 = vmul.f32 -1.442695, %v717_v15  ;;  %v824_v11 = vrot.slane %v2629_v8, 4 }
 0x9b9   :  { %v719_v14 = vpop.f32.mrf.mxu0  ;;  %2336 = vtanh.f32 %v717_v15 }
 0x9c5   :  { %v2335_v16 = vpop.eup %2334 }
 0x9c6   :  { %v727_v17 = vadd.f32 1.0, %v2335_v16  ;;  %v2337_v19 = vpop.eup %2336 }
 0x9c8   :  { %2338 = vrcp.f32 %v727_v17 }
 0x9c9   :  { %2340 = vpow2.f32 %v1999_v22 }
 0x9d5   :  { %v2339_v20 = vpop.eup %2338 }
 0x9d6   :  { %v735_v21 = vmul.f32 %v2339_v20, %v2337_v19  ;;  %v2341_v23 = vpop.eup %2340  ;;  %v734_v26 = vmul.f32 %v2339_v20, %v670_v59 }
 0x9d7   :  { %v728_v24 = vadd.f32 1.0, %v2341_v23 }
 0x9d8   :  { %737 = vrot.lane.b32.xlu0 %v735_v21, %s2520_s0 }
 0x9d9   :  { %2342 = vrcp.f32 %v728_v24 }
 0x9e6   :  { %v2343_v34 = vpop.eup %2342 }
 0xa4a   :  { %v738_v27 = vpop.permute.xlu0 %737 }
 0xa4b   :  { %v740_v30 = vadd.f32 %v738_v27, %v734_v26 }
 0xa4d   :  { %2344 = vtanh.f32 %v740_v30 }
 0xa5a   :  { %v2345_v38 = vpop.eup %2344 }
 0xa5b   :  { %v742_v39 = vmul.f32 %v2345_v38, %v2343_v34 }
 0xa5d   :  { %v2710_v40 = vpack.c.bf16 %v742_v39, %v742_v39 }
 0xa5f   :  { %745 = vrot.lane.b32.xlu1 %v2710_v40, %s2520_s0  ;;  %v971_v41 = vrot.slane %v2710_v40, 4 }
 0xa61   :  { %v988_v42 = vsel %vm986_vm9, %v985_v3, %v971_v41 }
 0xad1   :  { %v746_v43 = vpop.permute.xlu1 %745 }
 0xad2   :  { %2000 = vmatmul.mubr.msk.bf16.vlgmr.msra.gmra.mxu1 %vm78_vm0, %v746_v43  ;;  %v897_v43 = vrot.slane %v2627_v6, 6  ;;  %v2276_v6 = vld [vmem:[#allocation2 + $0xb0] ss:$8 sps:$4 sm:$0xff]  }
 0xad3   :  { %913 = vmatpush1.bf16.msra.mxu1 %v2578_v25  ;;  %936 = vmatprep.mubr.bf16.mxu1 %v2518_v0 }
 0xad4   :  { %914 = vmatprep.subr.bf16.mxu1 %v2581_v28 }
 0xad7   :  { %915 = vmatpush1.bf16.msra.mxu1 %v2583_v29  ;;  %v750_v29 = vrot.slane %v2629_v8, 2 }
 0xad8   :  { %916 = vmatprep.subr.bf16.mxu1 %v2587_v32 }
 0xadb   :  { %917 = vmatpush1.bf16.msra.mxu1 %v2589_v33 }
 0xadc   :  { %918 = vmatprep.subr.bf16.mxu1 %v2593_v35 }
 0xadf   :  { %919 = vmatpush1.bf16.msra.mxu1 %v2595_v36 }
 0xae0   :  { %2132 = vmatprep.subr.bf16.mxu1 %v2519_v18 }
 0xb92   :  { %v790_v45 = vpop.f32.mrf.mxu1 }
 0xb93   :  { %v791_v25 = vadd.f32 %v790_v45, %v749_v44 }
 0xb94   :  { %v792_v46 = vpop.f32.mrf.mxu1 }
 0xb95   :  { %v2001_v47 = vmul.f32 -1.442695, %v791_v25  ;;  %v793_v32 = vadd.f32 %v792_v46, %v750_v29 }
 0xb96   :  { %v794_v48 = vpop.f32.mrf.mxu1 }
 0xb97   :  { %2346 = vpow2.f32 %v2001_v47  ;;  %v2002_v51 = vmul.f32 -1.442695, %v793_v32 }
 0xb98   :  { %v795_v28 = vpop.f32.mrf.mxu1  ;;  %2348 = vtanh.f32 %v793_v32 }
 0xb99   :  { %v898_v28 = vrot.slane %v2629_v8, 6  ;;  %v2280_v8 = vld [vmem:[#allocation2 + $0x90] ss:$8 sps:$4 sm:$0xff]  }
 0xba4   :  { %v2347_v49 = vpop.eup %2346 }
 0xba5   :  { %v803_v33 = vadd.f32 1.0, %v2347_v49  ;;  %v2349_v35 = vpop.eup %2348 }
 0xba7   :  { %2350 = vrcp.f32 %v803_v33 }
 0xba8   :  { %2352 = vpow2.f32 %v2002_v51  ;;  %v2278_v51 = vld [vmem:[#allocation2 + $0xa0] ss:$8 sps:$4 sm:$0xff]  }
 0xbb4   :  { %v2351_v36 = vpop.eup %2350 }
 0xbb5   :  { %v811_v50 = vmul.f32 %v2351_v36, %v2349_v35  ;;  %v2353_v52 = vpop.eup %2352  ;;  %v810_v54 = vmul.f32 %v2351_v36, %v740_v30 }
 0xbb6   :  { %v804_v53 = vadd.f32 1.0, %v2353_v52  ;;  %v2279_v52 = vld [vmem:[#allocation2 + $0xe0] ss:$8 sps:$4 sm:$0xff]  }
 0xbb7   :  { %813 = vrot.lane.b32.xlu0 %v811_v50, %s2520_s0  ;;  %v2277_v50 = vld [vmem:[#allocation2 + $0xf0] ss:$8 sps:$4 sm:$0xff]  }
 0xbb8   :  { %2354 = vrcp.f32 %v804_v53  ;;  %v2281_v53 = vld [vmem:[#allocation2 + $0xd0] ss:$8 sps:$4 sm:$0xff]  }
 0xbc5   :  { %v2355_v61 = vpop.eup %2354 }
 0xc29   :  { %v814_v55 = vpop.permute.xlu0 %813 }
 0xc2a   :  { %v816_v13 = vadd.f32 %v814_v55, %v810_v54  ;;  %v2282_v54 = vld [vmem:[#allocation2 + $0x80] ss:$8 sps:$4 sm:$0xff]  }
 0xc2c   :  { %2356 = vtanh.f32 %v816_v13 }
 0xc39   :  { %v2357_v56 = vpop.eup %2356 }
 0xc3a   :  { %v818_v57 = vmul.f32 %v2357_v56, %v2355_v61 }
 0xc3c   :  { %v2729_v58 = vpack.c.bf16 %v818_v57, %v818_v57 }
 0xc3e   :  { %821 = vrot.lane.b32.xlu1 %v2729_v58, %s2520_s0  ;;  %v972_v59 = vrot.slane %v2729_v58, 3 }
 0xc40   :  { %v991_v10 = vsel %vm989_vm10, %v988_v42, %v972_v59 }
 0xcb0   :  { %v822_v62 = vpop.permute.xlu1 %821 }
 0xcb1   :  { %2003 = vmatmul.mubr.msk.bf16.vlgmr.msra.gmra.mxu0 %vm78_vm0, %v822_v62 }
 0xcb2   :  { %2121 = vmatpush3.bf16.msra.mxu0 %v2277_v50  ;;  %2128 = vmatprep.mubr.msk.bf16.mxu0 %vm2521_vm12, %v2519_v18 }
 0xcb3   :  { %2122 = vmatprep.subr.bf16.mxu0 %v2519_v18 }
 0xcb6   :  { %2123 = vmatpush3.bf16.msra.mxu0 %v2279_v52 }
 0xcb7   :  { %2124 = vmatprep.subr.bf16.mxu0 %v2519_v18 }
 0xcba   :  { %2125 = vmatpush3.bf16.msra.mxu0 %v2281_v53 }
 0xcbb   :  { %2126 = vmatprep.subr.bf16.mxu0 %v2519_v18 }
 0xd71   :  { %v864_v2 = vpop.f32.mrf.mxu0 }
 0xd72   :  { %v865_v3 = vadd.f32 %v864_v2, %v823_v63 }
 0xd73   :  { %v866_v4 = vpop.f32.mrf.mxu0 }
 0xd74   :  { %v2004_v5 = vmul.f32 -1.442695, %v865_v3  ;;  %v867_v12 = vadd.f32 %v866_v4, %v824_v11 }
 0xd75   :  { %v868_v7 = vpop.f32.mrf.mxu0 }
 0xd76   :  { %2358 = vpow2.f32 %v2004_v5  ;;  %v2005_v20 = vmul.f32 -1.442695, %v867_v12  ;;  %v999_v5 = vrot.slane %v2729_v58, 6  ;;  %v1000_v7 = vrot.slane %v2710_v40, 5 }
 0xd77   :  { %v869_v9 = vpop.f32.mrf.mxu0  ;;  %2360 = vtanh.f32 %v867_v12  ;;  %v1001_v12 = vrot.slane %v2691_v1, 4  ;;  %v1003_v58 = vrot.slane %v2652_v60, 2  ;;  %v1004_v40 = vrot.slane %v2635_v31, 1  ;;  %v2787_v60 = vld [vmem:[#allocation2 + $0x100] ss:$8 sps:$4 sm:$0xff]  }
 0xd83   :  { %v2359_v14 = vpop.eup %2358 }
 0xd84   :  { %v877_v15 = vadd.f32 1.0, %v2359_v14  ;;  %v2361_v16 = vpop.eup %2360 }
 0xd86   :  { %2362 = vrcp.f32 %v877_v15  ;;  %v1002_v15 = vrot.slane %v2670_v37, 3 }
 0xd87   :  { %2364 = vpow2.f32 %v2005_v20 }
 0xd93   :  { %v2363_v17 = vpop.eup %2362 }
 0xd94   :  { %v885_v19 = vmul.f32 %v2363_v17, %v2361_v16  ;;  %v2365_v21 = vpop.eup %2364  ;;  %v884_v23 = vmul.f32 %v2363_v17, %v816_v13 }
 0xd95   :  { %v878_v22 = vadd.f32 1.0, %v2365_v21 }
 0xd96   :  { %887 = vrot.lane.b32.xlu0 %v885_v19, %s2520_s0 }
 0xd97   :  { %2366 = vrcp.f32 %v878_v22  ;;  %v2779_v22 = vld [vmem:[#allocation2 + $0x110] ss:$8 sps:$4 sm:$0xff]  }
 0xda4   :  { %v2367_v27 = vpop.eup %2366 }
 0xe08   :  { %v888_v24 = vpop.permute.xlu0 %887 }
 0xe09   :  { %v890_v26 = vadd.f32 %v888_v24, %v884_v23 }
 0xe0b   :  { %2368 = vtanh.f32 %v890_v26 }
 0xe18   :  { %v2369_v30 = vpop.eup %2368 }
 0xe19   :  { %v892_v34 = vmul.f32 %v2369_v30, %v2367_v27 }
 0xe1b   :  { %v2739_v38 = vpack.c.bf16 %v892_v34, %v892_v34 }
 0xe1d   :  { %895 = vrot.lane.b32.xlu1 %v2739_v38, %s2520_s0  ;;  %v973_v39 = vrot.slane %v2739_v38, 2  ;;  %v998_v3 = vrot.slane %v2739_v38, 7 }
 0xe1f   :  { %v2745_v41 = vsel %vm992_vm11, %v991_v10, %v973_v39  ;;  %v2283_v10 = vld [vmem:[#allocation2 + $0xc0] ss:$8 sps:$4 sm:$0xff]   ;;  %v1036_v39 = vld [vmem:[#allocation5 + $0x10] ss:$0 sm:$0xff] }
 0xe20   :  { %2127 = vmatpush3.bf16.msra.mxu0 %v2283_v10 }
 0xe21   :  { %2144 = vmatprep.subr.bf16.mxu0 %v2519_v18 }
 0xe8f   :  { %v896_v42 = vpop.permute.xlu1 %895 }
 0xe90   :  { %2006 = vmatmul.mubr.msk.bf16.vlgmr.msra.gmra.mxu1 %vm78_vm0, %v896_v42 }
 0xe91   :  { %2133 = vmatpush3.bf16.msra.mxu1 %v2276_v6  ;;  %2140 = vmatprep.mubr.msk.bf16.mxu1 %vm2521_vm12, %v2519_v18 }
 0xe92   :  { %2134 = vmatprep.subr.bf16.mxu1 %v2519_v18 }
 0xe95   :  { %2135 = vmatpush3.bf16.msra.mxu1 %v2278_v51 }
 0xe96   :  { %2136 = vmatprep.subr.bf16.mxu1 %v2519_v18 }
 0xe99   :  { %2137 = vmatpush3.bf16.msra.mxu1 %v2280_v8 }
 0xe9a   :  { %2138 = vmatprep.subr.bf16.mxu1 %v2519_v18 }
 0xe9d   :  { %2139 = vmatpush3.bf16.msra.mxu1 %v2282_v54 }
 0xe9e   :  { %2152 = vmatprep.subr.bf16.mxu1 %v2519_v18 }
 0xf50   :  { %v938_v44 = vpop.f32.mrf.mxu1 }
 0xf51   :  { %v939_v45 = vadd.f32 %v938_v44, %v897_v43 }
 0xf52   :  { %v940_v25 = vpop.f32.mrf.mxu1 }
 0xf53   :  { %v2007_v46 = vmul.f32 -1.442695, %v939_v45  ;;  %v941_v29 = vadd.f32 %v940_v25, %v898_v28 }
 0xf54   :  { %v942_v47 = vpop.f32.mrf.mxu1 }
 0xf55   :  { %2370 = vpow2.f32 %v2007_v46  ;;  %v2008_v55 = vmul.f32 -1.442695, %v941_v29 }
 0xf56   :  { %v943_v48 = vpop.f32.mrf.mxu1  ;;  %2372 = vtanh.f32 %v941_v29 }
 0xf62   :  { %v2371_v32 = vpop.eup %2370 }
 0xf63   :  { %v951_v49 = vadd.f32 1.0, %v2371_v32  ;;  %v2373_v33 = vpop.eup %2372 }
 0xf65   :  { %2374 = vrcp.f32 %v951_v49 }
 0xf66   :  { %2376 = vpow2.f32 %v2008_v55 }
 0xf72   :  { %v2375_v35 = vpop.eup %2374 }
 0xf73   :  { %v959_v36 = vmul.f32 %v2375_v35, %v2373_v33  ;;  %v2377_v13 = vpop.eup %2376  ;;  %v958_v56 = vmul.f32 %v2375_v35, %v890_v26 }
 0xf74   :  { %v952_v61 = vadd.f32 1.0, %v2377_v13 }
 0xf75   :  { %961 = vrot.lane.b32.xlu0 %v959_v36, %s2520_s0 }
 0xf76   :  { %2378 = vrcp.f32 %v952_v61 }
 0xf83   :  { %v2379_v62 = vpop.eup %2378 }
 0xfe7   :  { %v962_v57 = vpop.permute.xlu0 %961 }
 0xfe8   :  { %v964_v59 = vadd.f32 %v962_v57, %v958_v56 }
 0xfea   :  { %2380 = vtanh.f32 %v964_v59 }
 0xff7   :  { %v2381_v63 = vpop.eup %2380 }
 0xff8   :  { %v966_v2 = vmul.f32 %v2381_v63, %v2379_v62 }
 0xffa   :  { %v967_v4 = vpack.c.bf16 %v966_v2, %v966_v2 }
 0xffc   :  { %v975_v9 = vrot.slane %v967_v4, 1  ;;  %v1007_v11 = vsel %vm976_vm6, %v967_v4, %v998_v3 }
 0xffd   :  { %v1009_v14 = vsel %vm980_vm7, %v1007_v11, %v999_v5 }
 0xffe   :  { %v997_v16 = vsel %vm995_vm13, %v2745_v41, %v975_v9  ;;  %v1011_v17 = vsel %vm983_vm8, %v1009_v14, %v1000_v7 }
 0xfff   :  { %1109 = vrot.lane.b32.xlu0 %v997_v16, %s2520_s0  ;;  %v1013_v19 = vsel %vm986_vm9, %v1011_v17, %v1001_v12 }
0x1000   :  { %v1015_v20 = vsel %vm989_vm10, %v1013_v19, %v1002_v15 }
0x1001   :  { %v1017_v1 = vsel %vm992_vm11, %v1015_v20, %v1003_v58 }
0x1002   :  { %v1019_v21 = vsel %vm995_vm13, %v1017_v1, %v1004_v40 }
0x1003   :  { %1038 = vrot.lane.b32.xlu1 %v1019_v21, %s2520_s0 }
0x1071   :  { %v1110_v37 = vpop.permute.xlu0 %1109 }
0x1072   :  { %2141 = vmatmul.mubr.msk.bf16.vlgmr.msra.gmra.mxu1 %vm78_vm0, %v1110_v37 }
0x1073   :  { %2153 = vmatpush3.bf16.msra.mxu1 %v2779_v22  ;;  %2156 = vmatprep.mubr.msk.bf16.mxu1 %vm2521_vm12, %v2519_v18 }
0x1074   :  { %2154 = vmatprep.subr.bf16.mxu1 %v2519_v18 }
0x1075   :  { %v1039_v31 = vpop.permute.xlu1 %1038 }
0x1076   :  { %2129 = vmatmul.mubr.msk.bf16.vlgmr.msra.gmra.mxu0 %vm78_vm0, %v1039_v31 }
0x1077   :  { %2145 = vmatpush3.bf16.msra.mxu0 %v2779_v22  ;;  %2148 = vmatprep.mubr.msk.bf16.mxu0 %vm2521_vm12, %v2519_v18 }
0x1078   :  { %2146 = vmatprep.subr.bf16.mxu0 %v2519_v18  ;;  %2155 = vmatpush3.bf16.msra.mxu1 %v2787_v60 }
0x1079   :  { %2168 = vmatprep.subr.bf16.mxu1 %v2519_v18 }
0x107b   :  { %2147 = vmatpush3.bf16.msra.mxu0 %v2787_v60 }
0x107c   :  { %2160 = vmatprep.subr.bf16.mxu0 %v2519_v18 }
0x107e   :  { %2149 = vmatmul.mubr.bf16.vlgmr.msra.gmra.mxu0 %v2518_v0 }
0x107f   :  { %2161 = vmatpush3.bf16.msra.mxu0 %v2779_v22  ;;  %2164 = vmatprep.mubr.msk.bf16.mxu0 %vm2521_vm12, %v2519_v18 }
0x1080   :  { %2162 = vmatprep.subr.bf16.mxu0 %v2519_v18 }
0x1083   :  { %2163 = vmatpush3.bf16.msra.mxu0 %v2787_v60 }
0x1084   :  { %2176 = vmatprep.subr.bf16.mxu0 %v2519_v18 }
0x1132   :  { %v1172_v23 = vpop.f32.mrf.mxu1 }
0x1134   :  { %v2142_v24 = vpop.f32.mrf.mxu1 }
0x1136   :  { %v1101_v26 = vpop.f32.mrf.mxu0  ;;  %v1175_v27 = vpop.f32.mrf.mxu1 }
0x1137   :  { %v1173_v38 = vadd.f32 %v1172_v23, %v1101_v26 }
0x1138   :  { %v2130_v30 = vpop.f32.mrf.mxu0  ;;  %v2143_v34 = vpop.f32.mrf.mxu1 }
0x1139   :  { %v2804_v43 = vadd.f32 %v1173_v38, %v1036_v39 }
0x113a   :  { %v1104_v0 = vpop.f32.mrf.mxu0 }
0x113b   :  { %v1176_v41 = vadd.f32 %v1175_v27, %v1104_v0  ;;  %v1269_v13 = vrot.slane %v2804_v43, 2  ;;  %v1343_v19 = vrot.slane %v2804_v43, 4 }
0x113c   :  { %v2131_v42 = vpop.f32.mrf.mxu0 }
0x113d   :  { %v2806_v44 = vadd.f32 %v1176_v41, %v1036_v39 }
0x113e   :  { %v1233_v45 = vpop.f32.mrf.mxu0 }
0x113f   :  { %v1234_v25 = vadd.f32 %v1233_v45, %v2804_v43 }
0x1140   :  { %v2150_v46 = vpop.f32.mrf.mxu0 }
0x1141   :  { %2382 = vtanh.f32 %v1234_v25  ;;  %v2021_v29 = vmul.f32 -1.442695, %v1234_v25 }
0x1142   :  { %v1236_v47 = vpop.f32.mrf.mxu0 }
0x1143   :  { %2384 = vpow2.f32 %v2021_v29 }
0x1144   :  { %v2151_v48 = vpop.f32.mrf.mxu0 }
0x114e   :  { %v2383_v28 = vpop.eup %2382 }
0x114f   :  { %1248 = vrot.lane.b32.xlu1 %v2383_v28, %s2520_s0  ;;  %v1417_v28 = vrot.slane %v2804_v43, 6 }
0x1150   :  { %v2385_v32 = vpop.eup %2384 }
0x1151   :  { %v1242_v49 = vadd.f32 1.0, %v2385_v32 }
0x1153   :  { %2386 = vrcp.f32 %v1242_v49 }
0x1160   :  { %v2387_v33 = vpop.eup %2386 }
0x1161   :  { %v1246_v6 = vmul.f32 0.0, %v2387_v33 }
0x11c1   :  { %v1249_v35 = vpop.permute.xlu1 %1248 }
0x11c2   :  { %v1251_v36 = vmul.f32 %v2387_v33, %v1249_v35 }
0x11c4   :  { %1253 = vrot.lane.b32.xlu0 %v1251_v36, %s2522_s5 }
0x1236   :  { %v1254_v50 = vpop.permute.xlu0 %1253 }
0x1237   :  { %v1256_v51 = vadd.f32 %v1254_v50, %v1246_v6 }
0x1239   :  { %2388 = vtanh.f32 %v1256_v51 }
0x1246   :  { %v2389_v52 = vpop.eup %2388 }
0x1247   :  { %1259 = vrot.lane.b32.xlu1 %v2389_v52, %s2520_s0 }
0x12b9   :  { %v1260_v8 = vpop.permute.xlu1 %1259 }
0x12ba   :  { %v2812_v53 = vmul.f32 %v2387_v33, %v1260_v8 }
0x12bc   :  { %v1263_v54 = vpack.c.bf16 %v2812_v53, %v2812_v53 }
0x12be   :  { %1266 = vrot.lane.b32.xlu0 %v1263_v54, %s2522_s5 }
0x1330   :  { %v1267_v55 = vpop.permute.xlu0 %1266 }
0x1331   :  { %2157 = vmatmul.mubr.msk.bf16.vlgmr.msra.gmra.mxu1 %vm207_vm5, %v1267_v55 }
0x1332   :  { %2169 = vmatpush3.bf16.msra.mxu1 %v2779_v22  ;;  %2172 = vmatprep.mubr.msk.bf16.mxu1 %vm2521_vm12, %v2519_v18 }
0x1333   :  { %2170 = vmatprep.subr.bf16.mxu1 %v2519_v18 }
0x1336   :  { %2171 = vmatpush3.bf16.msra.mxu1 %v2787_v60 }
0x1337   :  { %2184 = vmatprep.subr.bf16.mxu1 %v2519_v18 }
0x13f1   :  { %v1308_v61 = vpop.f32.mrf.mxu1 }
0x13f2   :  { %v1309_v56 = vadd.f32 %v1308_v61, %v1269_v13 }
0x13f3   :  { %v2158_v57 = vpop.f32.mrf.mxu1 }
0x13f4   :  { %2390 = vtanh.f32 %v1309_v56  ;;  %v2023_v63 = vmul.f32 -1.442695, %v1309_v56 }
0x13f5   :  { %v1311_v59 = vpop.f32.mrf.mxu1 }
0x13f6   :  { %2392 = vpow2.f32 %v2023_v63 }
0x13f7   :  { %v2159_v10 = vpop.f32.mrf.mxu1 }
0x1401   :  { %v2391_v62 = vpop.eup %2390 }
0x1402   :  { %1323 = vrot.lane.b32.xlu1 %v2391_v62, %s2520_s0 }
0x1403   :  { %v2393_v2 = vpop.eup %2392 }
0x1404   :  { %v1317_v3 = vadd.f32 1.0, %v2393_v2 }
0x1406   :  { %2394 = vrcp.f32 %v1317_v3 }
0x1413   :  { %v2395_v4 = vpop.eup %2394 }
0x1414   :  { %v1321_v9 = vmul.f32 %v2395_v4, %v1256_v51 }
0x1474   :  { %v1324_v5 = vpop.permute.xlu1 %1323 }
0x1475   :  { %v1326_v7 = vmul.f32 %v2395_v4, %v1324_v5 }
0x1477   :  { %1328 = vrot.lane.b32.xlu0 %v1326_v7, %s2522_s5 }
0x14e9   :  { %v1329_v11 = vpop.permute.xlu0 %1328 }
0x14ea   :  { %v1331_v12 = vadd.f32 %v1329_v11, %v1321_v9 }
0x14ec   :  { %2396 = vtanh.f32 %v1331_v12 }
0x14f9   :  { %v2397_v14 = vpop.eup %2396 }
0x14fa   :  { %1334 = vrot.lane.b32.xlu1 %v2397_v14, %s2520_s0 }
0x156c   :  { %v1335_v15 = vpop.permute.xlu1 %1334 }
0x156d   :  { %v1337_v16 = vmul.f32 %v2395_v4, %v1335_v15 }
0x156f   :  { %v1338_v17 = vpack.c.bf16 %v1337_v16, %v1337_v16  ;;  %v1339_v45 = vadd.f32 %v1337_v16, %v2812_v53 }
0x1571   :  { %1341 = vrot.lane.b32.xlu0 %v1338_v17, %s2522_s5 }
0x15e3   :  { %v1342_v58 = vpop.permute.xlu0 %1341 }
0x15e4   :  { %2165 = vmatmul.mubr.msk.bf16.vlgmr.msra.gmra.mxu0 %vm207_vm5, %v1342_v58 }
0x15e5   :  { %2177 = vmatpush3.bf16.msra.mxu0 %v2779_v22  ;;  %2180 = vmatprep.mubr.msk.bf16.mxu0 %vm2521_vm12, %v2519_v18 }
0x15e6   :  { %2178 = vmatprep.subr.bf16.mxu0 %v2519_v18 }
0x15e9   :  { %2179 = vmatpush3.bf16.msra.mxu0 %v2787_v60 }
0x15ea   :  { %2192 = vmatprep.subr.bf16.mxu0 %v2519_v18 }
0x16a4   :  { %v1382_v40 = vpop.f32.mrf.mxu0 }
0x16a5   :  { %v1383_v20 = vadd.f32 %v1382_v40, %v1343_v19 }
0x16a6   :  { %v2166_v1 = vpop.f32.mrf.mxu0 }
0x16a7   :  { %2398 = vtanh.f32 %v1383_v20  ;;  %v2025_v23 = vmul.f32 -1.442695, %v1383_v20 }
0x16a8   :  { %v1385_v21 = vpop.f32.mrf.mxu0 }
0x16a9   :  { %2400 = vpow2.f32 %v2025_v23 }
0x16aa   :  { %v2167_v37 = vpop.f32.mrf.mxu0 }
0x16b4   :  { %v2399_v31 = vpop.eup %2398 }
0x16b5   :  { %1397 = vrot.lane.b32.xlu1 %v2399_v31, %s2520_s0  ;;  %v1564_v31 = vrot.slane %v2806_v44, 2 }
0x16b6   :  { %v2401_v24 = vpop.eup %2400 }
0x16b7   :  { %v1391_v26 = vadd.f32 1.0, %v2401_v24 }
0x16b9   :  { %2402 = vrcp.f32 %v1391_v26 }
0x16c6   :  { %v2403_v27 = vpop.eup %2402 }
0x16c7   :  { %v1395_v38 = vmul.f32 %v2403_v27, %v1331_v12 }
0x1727   :  { %v1398_v30 = vpop.permute.xlu1 %1397 }
0x1728   :  { %v1400_v34 = vmul.f32 %v2403_v27, %v1398_v30 }
0x172a   :  { %1402 = vrot.lane.b32.xlu0 %v1400_v34, %s2522_s5 }
0x179c   :  { %v1403_v39 = vpop.permute.xlu0 %1402 }
0x179d   :  { %v1405_v0 = vadd.f32 %v1403_v39, %v1395_v38 }
0x179f   :  { %2404 = vtanh.f32 %v1405_v0 }
0x17ac   :  { %v2405_v41 = vpop.eup %2404 }
0x17ad   :  { %1408 = vrot.lane.b32.xlu1 %v2405_v41, %s2520_s0 }
0x181f   :  { %v1409_v42 = vpop.permute.xlu1 %1408 }
0x1820   :  { %v1411_v25 = vmul.f32 %v2403_v27, %v1409_v42 }
0x1822   :  { %v1412_v46 = vpack.c.bf16 %v1411_v25, %v1411_v25  ;;  %v1413_v47 = vadd.f32 %v1411_v25, %v1339_v45 }
0x1824   :  { %1415 = vrot.lane.b32.xlu0 %v1412_v46, %s2522_s5 }
0x1896   :  { %v1416_v48 = vpop.permute.xlu0 %1415 }
0x1897   :  { %2173 = vmatmul.mubr.msk.bf16.vlgmr.msra.gmra.mxu1 %vm207_vm5, %v1416_v48 }
0x1898   :  { %2185 = vmatpush3.bf16.msra.mxu1 %v2779_v22  ;;  %2188 = vmatprep.mubr.msk.bf16.mxu1 %vm2521_vm12, %v2519_v18 }
0x1899   :  { %2186 = vmatprep.subr.bf16.mxu1 %v2519_v18 }
0x189c   :  { %2187 = vmatpush3.bf16.msra.mxu1 %v2787_v60 }
0x189d   :  { %2200 = vmatprep.subr.bf16.mxu1 %v2519_v18 }
0x1957   :  { %v1456_v29 = vpop.f32.mrf.mxu1 }
0x1958   :  { %v1457_v32 = vadd.f32 %v1456_v29, %v1417_v28 }
0x1959   :  { %v2174_v49 = vpop.f32.mrf.mxu1 }
0x195a   :  { %2406 = vtanh.f32 %v1457_v32  ;;  %v2027_v6 = vmul.f32 -1.442695, %v1457_v32  ;;  %v1638_v49 = vrot.slane %v2806_v44, 4 }
0x195b   :  { %v1459_v33 = vpop.f32.mrf.mxu1 }
0x195c   :  { %2408 = vpow2.f32 %v2027_v6 }
0x195d   :  { %v2175_v35 = vpop.f32.mrf.mxu1 }
0x1967   :  { %v2407_v36 = vpop.eup %2406 }
0x1968   :  { %1471 = vrot.lane.b32.xlu1 %v2407_v36, %s2520_s0 }
0x1969   :  { %v2409_v50 = vpop.eup %2408 }
0x196a   :  { %v1465_v51 = vadd.f32 1.0, %v2409_v50 }
0x196c   :  { %2410 = vrcp.f32 %v1465_v51 }
0x1979   :  { %v2411_v52 = vpop.eup %2410 }
0x197a   :  { %v1469_v43 = vmul.f32 %v2411_v52, %v1405_v0 }
0x19da   :  { %v1472_v8 = vpop.permute.xlu1 %1471 }
0x19db   :  { %v1474_v53 = vmul.f32 %v2411_v52, %v1472_v8 }
0x19dd   :  { %1476 = vrot.lane.b32.xlu0 %v1474_v53, %s2522_s5 }
0x1a4f   :  { %v1477_v54 = vpop.permute.xlu0 %1476 }
0x1a50   :  { %v1479_v55 = vadd.f32 %v1477_v54, %v1469_v43 }
0x1a52   :  { %2412 = vtanh.f32 %v1479_v55 }
0x1a5f   :  { %v2413_v13 = vpop.eup %2412 }
0x1a60   :  { %1482 = vrot.lane.b32.xlu1 %v2413_v13, %s2520_s0 }
0x1ad2   :  { %v1483_v61 = vpop.permute.xlu1 %1482 }
0x1ad3   :  { %v1485_v56 = vmul.f32 %v2411_v52, %v1483_v61 }
0x1ad5   :  { %v1486_v57 = vpack.c.bf16 %v1485_v56, %v1485_v56  ;;  %v1487_v59 = vadd.f32 %v1485_v56, %v1413_v47 }
0x1ad7   :  { %1489 = vrot.lane.b32.xlu0 %v1486_v57, %s2522_s5 }
0x1b49   :  { %v1490_v10 = vpop.permute.xlu0 %1489 }
0x1b4a   :  { %2181 = vmatmul.mubr.msk.bf16.vlgmr.msra.gmra.mxu0 %vm207_vm5, %v1490_v10 }
0x1b4b   :  { %2193 = vmatpush3.bf16.msra.mxu0 %v2779_v22  ;;  %2196 = vmatprep.mubr.msk.bf16.mxu0 %vm2521_vm12, %v2519_v18 }
0x1b4c   :  { %2194 = vmatprep.subr.bf16.mxu0 %v2519_v18 }
0x1b4f   :  { %2195 = vmatpush3.bf16.msra.mxu0 %v2787_v60 }
0x1b50   :  { %2208 = vmatprep.subr.mxu0 %v2519_v18 }
0x1c0a   :  { %v1528_v62 = vpop.f32.mrf.mxu0 }
0x1c0b   :  { %v1529_v63 = vadd.f32 %v1528_v62, %v2806_v44 }
0x1c0c   :  { %v2182_v2 = vpop.f32.mrf.mxu0 }
0x1c0d   :  { %2414 = vtanh.f32 %v1529_v63  ;;  %v2029_v7 = vmul.f32 -1.442695, %v1529_v63 }
0x1c0e   :  { %v1531_v3 = vpop.f32.mrf.mxu0 }
0x1c0f   :  { %2416 = vpow2.f32 %v2029_v7  ;;  %v1712_v3 = vrot.slane %v2806_v44, 6 }
0x1c10   :  { %v2183_v4 = vpop.f32.mrf.mxu0 }
0x1c1a   :  { %v2415_v5 = vpop.eup %2414 }
0x1c1b   :  { %1543 = vrot.lane.b32.xlu1 %v2415_v5, %s2520_s0 }
0x1c1c   :  { %v2417_v9 = vpop.eup %2416 }
0x1c1d   :  { %v1537_v11 = vadd.f32 1.0, %v2417_v9 }
0x1c1f   :  { %2418 = vrcp.f32 %v1537_v11 }
0x1c2c   :  { %v2419_v12 = vpop.eup %2418 }
0x1c2d   :  { %v1541_v16 = vmul.f32 %v2419_v12, %v1479_v55 }
0x1c8d   :  { %v1544_v14 = vpop.permute.xlu1 %1543 }
0x1c8e   :  { %v1546_v15 = vmul.f32 %v2419_v12, %v1544_v14 }
0x1c90   :  { %1548 = vrot.lane.b32.xlu0 %v1546_v15, %s2522_s5 }
0x1d02   :  { %v1549_v17 = vpop.permute.xlu0 %1548 }
0x1d03   :  { %v1551_v58 = vadd.f32 %v1549_v17, %v1541_v16 }
0x1d05   :  { %2420 = vtanh.f32 %v1551_v58 }
0x1d12   :  { %v2421_v19 = vpop.eup %2420 }
0x1d13   :  { %1554 = vrot.lane.b32.xlu1 %v2421_v19, %s2520_s0 }
0x1d85   :  { %v1555_v40 = vpop.permute.xlu1 %1554 }
0x1d86   :  { %v1557_v20 = vmul.f32 %v2419_v12, %v1555_v40 }
0x1d88   :  { %v1558_v1 = vpack.c.bf16 %v1557_v20, %v1557_v20  ;;  %v1559_v21 = vadd.f32 %v1557_v20, %v1487_v59 }
0x1d8a   :  { %1561 = vrot.lane.b32.xlu0 %v1558_v1, %s2522_s5  ;;  %v1785_v1 = vld [vmem:[#allocation5 + $0xd0] sm:$0xff] }
0x1dfc   :  { %v1562_v37 = vpop.permute.xlu0 %1561 }
0x1dfd   :  { %2189 = vmatmul.mubr.msk.bf16.vlgmr.msra.gmra.mxu1 %vm207_vm5, %v1562_v37  ;;  %v1783_v37 = vld [vmem:[#allocation5 + $0xb0] sm:$0xff] }
0x1dfe   :  { %2201 = vmatpush3.bf16.msra.mxu1 %v2779_v22  ;;  %2204 = vmatprep.mubr.msk.bf16.mxu1 %vm2521_vm12, %v2519_v18 }
0x1dff   :  { %2202 = vmatprep.subr.bf16.mxu1 %v2519_v18 }
0x1e02   :  { %2203 = vmatpush3.bf16.msra.mxu1 %v2787_v60 }
0x1e03   :  { %2219 = vmatprep.subr.mxu1 %v2519_v18 }
0x1ebd   :  { %v1603_v23 = vpop.f32.mrf.mxu1 }
0x1ebe   :  { %v1604_v24 = vadd.f32 %v1603_v23, %v1564_v31  ;;  %v1782_v31 = vld [vmem:[#allocation5 + $0xa0] sm:$0xff] }
0x1ebf   :  { %v2190_v26 = vpop.f32.mrf.mxu1 }
0x1ec0   :  { %2422 = vtanh.f32 %v1604_v24  ;;  %v2031_v22 = vmul.f32 -1.442695, %v1604_v24  ;;  %v1794_v24 = vld [vmem:[#allocation5 + $0x160] sm:$0xff]  ;;  %v1793_v26 = vld [vmem:[#allocation5 + $0x150] sm:$0xff] }
0x1ec1   :  { %v1606_v27 = vpop.f32.mrf.mxu1 }
0x1ec2   :  { %2424 = vpow2.f32 %v2031_v22  ;;  %v1792_v27 = vld [vmem:[#allocation5 + $0x140] sm:$0xff] }
0x1ec3   :  { %v2191_v30 = vpop.f32.mrf.mxu1  ;;  %v1790_v22 = vld [vmem:[#allocation5 + $0x120] sm:$0xff] }
0x1ec4   :  { %v1791_v30 = vld [vmem:[#allocation5 + $0x130] sm:$0xff] }
0x1ecd   :  { %v2423_v34 = vpop.eup %2422 }
0x1ece   :  { %1618 = vrot.lane.b32.xlu1 %v2423_v34, %s2520_s0 }
0x1ecf   :  { %v2425_v38 = vpop.eup %2424 }
0x1ed0   :  { %v1612_v39 = vadd.f32 1.0, %v2425_v38 }
0x1ed2   :  { %2426 = vrcp.f32 %v1612_v39 }
0x1edf   :  { %v2427_v0 = vpop.eup %2426 }
0x1ee0   :  { %v1616_v42 = vmul.f32 %v2427_v0, %v1551_v58 }
0x1f40   :  { %v1619_v60 = vpop.permute.xlu1 %1618 }
0x1f41   :  { %v1621_v41 = vmul.f32 %v2427_v0, %v1619_v60 }
0x1f43   :  { %1623 = vrot.lane.b32.xlu0 %v1621_v41, %s2522_s5  ;;  %v1789_v41 = vld [vmem:[#allocation5 + $0x110] sm:$0xff] }
0x1fb5   :  { %v1624_v45 = vpop.permute.xlu0 %1623 }
0x1fb6   :  { %v1626_v25 = vadd.f32 %v1624_v45, %v1616_v42  ;;  %v1788_v42 = vld [vmem:[#allocation5 + $0x100] sm:$0xff]  ;;  %v1787_v45 = vld [vmem:[#allocation5 + $0xf0] sm:$0xff] }
0x1fb8   :  { %2428 = vtanh.f32 %v1626_v25 }
0x1fc5   :  { %v2429_v46 = vpop.eup %2428 }
0x1fc6   :  { %1629 = vrot.lane.b32.xlu1 %v2429_v46, %s2520_s0 }
0x2038   :  { %v1630_v47 = vpop.permute.xlu1 %1629 }
0x2039   :  { %v1632_v48 = vmul.f32 %v2427_v0, %v1630_v47 }
0x203b   :  { %v1633_v28 = vpack.c.bf16 %v1632_v48, %v1632_v48  ;;  %v1634_v29 = vadd.f32 %v1632_v48, %v1559_v21  ;;  %v1784_v21 = vld [vmem:[#allocation5 + $0xc0] sm:$0xff] }
0x203d   :  { %1636 = vrot.lane.b32.xlu0 %v1633_v28, %s2522_s5 }
0x20af   :  { %v1637_v32 = vpop.permute.xlu0 %1636 }
0x20b0   :  { %2197 = vmatmul.mubr.msk.bf16.vlgmr.msra.gmra.mxu0 %vm207_vm5, %v1637_v32 }
0x20b1   :  { %2216 = vmatprep.mubr.msk.f32.mxu0 %vm2521_vm12, %v2519_v18  ;;  %2209 = vmatpush3.msra.mxu0 %v1785_v1 }
0x20b2   :  { %2210 = vmatprep.subr.mxu0 %v2519_v18 }
0x20b3   :  { %2211 = vmatpush3.msra.mxu0 %v1784_v21 }
0x20b4   :  { %2212 = vmatprep.subr.mxu0 %v2519_v18 }
0x20b5   :  { %2213 = vmatpush3.msra.mxu0 %v1783_v37 }
0x20b6   :  { %2214 = vmatprep.subr.mxu0 %v2519_v18 }
0x20b7   :  { %2215 = vmatpush3.msra.mxu0 %v1782_v31 }
0x2170   :  { %v1677_v33 = vpop.f32.mrf.mxu0 }
0x2171   :  { %v1678_v35 = vadd.f32 %v1677_v33, %v1638_v49 }
0x2172   :  { %v2198_v36 = vpop.f32.mrf.mxu0 }
0x2173   :  { %2430 = vtanh.f32 %v1678_v35  ;;  %v2033_v52 = vmul.f32 -1.442695, %v1678_v35 }
0x2174   :  { %v1680_v6 = vpop.f32.mrf.mxu0 }
0x2175   :  { %2432 = vpow2.f32 %v2033_v52 }
0x2176   :  { %v2199_v50 = vpop.f32.mrf.mxu0 }
0x2180   :  { %v2431_v51 = vpop.eup %2430 }
0x2181   :  { %1692 = vrot.lane.b32.xlu1 %v2431_v51, %s2520_s0 }
0x2182   :  { %v2433_v8 = vpop.eup %2432 }
0x2183   :  { %v1686_v53 = vadd.f32 1.0, %v2433_v8 }
0x2185   :  { %2434 = vrcp.f32 %v1686_v53 }
0x2192   :  { %v2435_v43 = vpop.eup %2434 }
0x2193   :  { %v1690_v13 = vmul.f32 %v2435_v43, %v1626_v25  ;;  %v1786_v25 = vld [vmem:[#allocation5 + $0xe0] ss:$0 sm:$0xff] }
0x21f3   :  { %v1693_v54 = vpop.permute.xlu1 %1692 }
0x21f4   :  { %v1695_v55 = vmul.f32 %v2435_v43, %v1693_v54 }
0x21f6   :  { %1697 = vrot.lane.b32.xlu0 %v1695_v55, %s2522_s5 }
0x2268   :  { %v1698_v61 = vpop.permute.xlu0 %1697 }
0x2269   :  { %v1700_v56 = vadd.f32 %v1698_v61, %v1690_v13 }
0x226b   :  { %2436 = vtanh.f32 %v1700_v56 }
0x2278   :  { %v2437_v57 = vpop.eup %2436 }
0x2279   :  { %1703 = vrot.lane.b32.xlu1 %v2437_v57, %s2520_s0 }
0x22eb   :  { %v1704_v59 = vpop.permute.xlu1 %1703 }
0x22ec   :  { %v1706_v10 = vmul.f32 %v2435_v43, %v1704_v59 }
0x22ee   :  { %v1707_v62 = vpack.c.bf16 %v1706_v10, %v1706_v10  ;;  %v1708_v63 = vadd.f32 %v1706_v10, %v1634_v29  ;;  %v1795_v29 = vld [vmem:[#allocation5 + $0x170] ss:$0 sm:$0xff] }
0x22f0   :  { %1710 = vrot.lane.b32.xlu0 %v1707_v62, %s2522_s5 }
0x2362   :  { %v1711_v2 = vpop.permute.xlu0 %1710 }
0x2363   :  { %2205 = vmatmul.mubr.msk.bf16.vlgmr.msra.gmra.mxu1 %vm207_vm5, %v1711_v2 }
0x2364   :  { %2235 = vmatprep.mubr.msk.f32.mxu1 %vm2521_vm12, %v2519_v18  ;;  %2220 = vmatpush3.msra.mxu1 %v1794_v24 }
0x2365   :  { %2221 = vmatprep.subr.mxu1 %v2519_v18 }
0x2366   :  { %2222 = vmatpush3.msra.mxu1 %v1793_v26 }
0x2367   :  { %2223 = vmatprep.subr.mxu1 %v2519_v18 }
0x2368   :  { %2224 = vmatpush3.msra.mxu1 %v1792_v27 }
0x2369   :  { %2225 = vmatprep.subr.mxu1 %v2519_v18 }
0x236a   :  { %2226 = vmatpush3.msra.mxu1 %v1791_v30 }
0x236b   :  { %2227 = vmatprep.subr.mxu1 %v2519_v18 }
0x236c   :  { %2228 = vmatpush3.msra.mxu1 %v1790_v22 }
0x236d   :  { %2229 = vmatprep.subr.mxu1 %v2519_v18 }
0x236e   :  { %2230 = vmatpush3.msra.mxu1 %v1789_v41 }
0x236f   :  { %2231 = vmatprep.subr.mxu1 %v2519_v18 }
0x2370   :  { %2232 = vmatpush3.msra.mxu1 %v1788_v42 }
0x2371   :  { %2233 = vmatprep.subr.mxu1 %v2519_v18 }
0x2372   :  { %2234 = vmatpush3.msra.mxu1 %v1787_v45 }
0x2423   :  { %v1751_v4 = vpop.f32.mrf.mxu1 }
0x2424   :  { %v1752_v5 = vadd.f32 %v1751_v4, %v1712_v3 }
0x2425   :  { %v2206_v7 = vpop.f32.mrf.mxu1 }
0x2426   :  { %2438 = vtanh.f32 %v1752_v5  ;;  %v2035_v14 = vmul.f32 -1.442695, %v1752_v5 }
0x2427   :  { %v1754_v9 = vpop.f32.mrf.mxu1 }
0x2428   :  { %2440 = vpow2.f32 %v2035_v14 }
0x2429   :  { %v2207_v11 = vpop.f32.mrf.mxu1 }
0x2433   :  { %v2439_v12 = vpop.eup %2438 }
0x2434   :  { %1766 = vrot.lane.b32.xlu1 %v2439_v12, %s2520_s0 }
0x2435   :  { %v2441_v15 = vpop.eup %2440 }
0x2436   :  { %v1760_v16 = vadd.f32 1.0, %v2441_v15 }
0x2438   :  { %2442 = vrcp.f32 %v1760_v16 }
0x2445   :  { %v2443_v17 = vpop.eup %2442 }
0x2446   :  { %v1764_v44 = vmul.f32 %v2443_v17, %v1700_v56 }
0x24a6   :  { %v1767_v58 = vpop.permute.xlu1 %1766 }
0x24a7   :  { %v1769_v19 = vmul.f32 %v2443_v17, %v1767_v58 }
0x24a9   :  { %1771 = vrot.lane.b32.xlu0 %v1769_v19, %s2522_s5 }
0x251b   :  { %v1772_v40 = vpop.permute.xlu0 %1771 }
0x251c   :  { %v1774_v20 = vadd.f32 %v1772_v40, %v1764_v44 }
0x251e   :  { %2444 = vtanh.f32 %v1774_v20 }
0x252b   :  { %v2445_v23 = vpop.eup %2444 }
0x252c   :  { %1777 = vrot.lane.b32.xlu1 %v2445_v23, %s2520_s0 }
0x259e   :  { %v1778_v34 = vpop.permute.xlu1 %1777 }
0x259f   :  { %v1780_v38 = vmul.f32 %v2443_v17, %v1778_v34 }
0x25a1   :  { %v1781_v39 = vadd.f32 %v1780_v38, %v1708_v63 }
0x25a3   :  { %v1796_v0 = vmul.f32 0.125, %v1781_v39 }
0x25a5   :  { %1798 = vrot.lane.b32.xlu0 %v1796_v0, %s2522_s5 }
0x2617   :  { %v1799_v60 = vpop.permute.xlu0 %1798 }
0x2618   :  { %2217 = vmatmul.mubr.msk.f32.vlgmr.msra.gmra.mxu0 %vm207_vm5, %v1799_v60 }
0x26d8   :  { %v1868_v46 = vpop.f32.mrf.mxu0 }
0x26d9   :  { %v1869_v47 = vadd.f32 %v1868_v46, %v1786_v25 }
0x26da   :  { %v2218_v48 = vpop.f32.mrf.mxu0 }
0x26db   :  { %v1872_v28 = vmax.f32 %v1869_v47, 0.0 }
0x26dd   :  { %2236 = vmatmul.mubr.msk.f32.vlgmr.msra.gmra.mxu1 %vm78_vm0, %v1872_v28 }
0x279d   :  { %v1942_v32 = vpop.f32.mrf.mxu1 }
0x279e   :  { %v1943_v49 = vadd.f32 %v1942_v32, %v1795_v29 }
0x279f   :  { %v2237_v33 = vpop.f32.mrf.mxu1 }
0x27a0   :  { %1947 = vst.msk [vmem:[#allocation7] sm:$0x3] %vm1946_vm14, %v1943_v49 }
0x27a1   :  { %2497 = shalt.err (!%p2494_p0)
}
0x27a2   :  { %1957 = dma.vmem_to_hbm [thread:$0]  %s1955_s7, 32, %s2912_s3, [#allocation4]  }
0x27a3   :  { %2510 = dma.done.wait [#allocation4], 32  }
0x27a4   :  { %2511 = vsyncadd [#allocation4], 4294967264 }
0x27a5   :  { %1961 = vsyncpa [#allocation3], 1 }
0x27a6   :  { %1962 = vsyncpa [#allocation6], 1 }
0x27a7   :  { %1963 = vsyncpa [#allocation4], 1 }

</bundles_post_ra>
